<compile_context>
chip_gen: v5e
topology: v5e:2x2
jax: 0.10.0
libtpu: 0.0.40
codegen_flags: <defaults>
</compile_context>

<pallas_src>
import functools
import math

import jax
import jax.numpy as jnp
from jax.experimental import pallas as pl
from jax.experimental.pallas import tpu as pltpu


def _multi_loss_kernel(t_logit_ref, t_tgt_ref, n_logit_ref, n_tgt_ref,
                       out_ref, ce_acc, focal_acc, inter_acc, total_acc,
                       *, gamma, fold):
    ti = pl.program_id(2)
    n_inner = pl.num_programs(2)

    # ---------------- per-(image, outer-tile) init ----------------
    @pl.when(ti == 0)
    def _():
        ce_acc[...] = jnp.zeros_like(ce_acc)
        focal_acc[...] = jnp.zeros_like(focal_acc)
        inter_acc[...] = jnp.zeros_like(inter_acc)
        total_acc[...] = jnp.zeros_like(total_acc)

    def fold_sum(x):
        # (R, 128) -> (fold, 128): pure cross-vreg VPU adds (no XLU work).
        r = x.shape[0]
        if r == fold:
            return x
        return jnp.sum(x.reshape(r // fold, fold, 128), axis=0)

    # ---------------- tissue branch: CE + dice partials ----------------
    t_logits = t_logit_ref[0].astype(jnp.float32)           # (Ct, R, 128)
    t_tgt = t_tgt_ref[0].astype(jnp.int32)                  # (R, 128)
    ct = t_logits.shape[0]

    m = jnp.max(t_logits, axis=0)                           # (R, 128)   VPU
    e = jnp.exp(t_logits - m[None])                         # (Ct,R,128) EUP
    s = jnp.sum(e, axis=0)                                  # (R, 128)   VPU
    inv_s = pl.reciprocal(s, approx=True)                   # EUP slot
    inv_s = inv_s * (2.0 - s * inv_s)                       # one Newton step

    tgt_logit = jnp.zeros_like(m)
    for c in range(ct):
        is_c = t_tgt == c                                    # cmp
        tgt_logit = jnp.where(is_c, t_logits[c], tgt_logit)  # select (no one-hot)
        sm_c = e[c] * inv_s                                   # softmax prob of c
        inter_acc[c] += fold_sum(jnp.where(is_c, sm_c, 0.0))
        total_acc[c] += fold_sum(sm_c + jnp.where(is_c, 1.0, 0.0))
    ce_acc[...] += fold_sum(m + jnp.log(s) - tgt_logit)      # per-pixel CE

    # ---------------- nuclei branch: focal partials ----------------
    n_logits = n_logit_ref[0].astype(jnp.float32)            # (Cn, R, 128)
    n_tgt = n_tgt_ref[0].astype(jnp.int32)
    cn = n_logits.shape[0]

    mn = jnp.max(n_logits, axis=0)
    sn = jnp.zeros_like(mn)
    tgt_logit_n = jnp.zeros_like(mn)
    for c in range(cn):
        sn = sn + jnp.exp(n_logits[c] - mn)
        tgt_logit_n = jnp.where(n_tgt == c, n_logits[c], tgt_logit_n)
    ce_n = mn + jnp.log(sn) - tgt_logit_n                     # per-pixel CE
    pt = jnp.exp(-ce_n)                                       # target prob (EUP)
    d = jnp.maximum(1.0 - pt, 0.0)

    g = float(gamma)
    if g == 0.0:
        w = jnp.ones_like(d)
    elif g == int(g) and 0 < int(g) <= 8:
        w = d
        for _ in range(int(g) - 1):
            w = w * d
    else:
        # non-integer gamma: clamp so pt==1 (d==0) does not produce log(0) NaNs
        w = jnp.where(d > 0.0,
                      jnp.exp(g * jnp.log(jnp.maximum(d, 1e-30))),
                      jnp.zeros_like(d))
    focal_acc[...] += fold_sum(w * ce_n)

    # ------------- finalize: pack scalar partials into one lane-dense row -------------
    @pl.when(ti == n_inner - 1)
    def _():
        lane = jax.lax.broadcasted_iota(jnp.int32, (8, 128), 1)
        vec = jnp.where(lane == 0, jnp.sum(ce_acc[...]), 0.0)
        vec = vec + jnp.where(lane == 1, jnp.sum(focal_acc[...]), 0.0)
        for c in range(ct):
            vec = vec + jnp.where(lane == 2 + c, jnp.sum(inter_acc[c]), 0.0)
            vec = vec + jnp.where(lane == 2 + ct + c, jnp.sum(total_acc[c]), 0.0)
        out_ref[0, 0] = vec


def _pick_tile_rows(rows_total, ct, cn, logit_bytes, row_align):
    """Rows of 128 pixels per grid step, sized against this chip's VMEM."""
    try:
        vmem_bytes = int(pltpu.get_tpu_info().vmem_capacity_bytes)
    except Exception:
        vmem_bytes = 64 * 1024 * 1024            # conservative (v7x per-TC)
    # Per-row (128 px) VMEM model:
    #   2x double-buffered inputs (logits in native dtype, targets counted at 4B)
    #   + compiler-materialized f32 temporaries (f32 casts, exp array, ~12 more
    #     full-tile values). Folded (8,128) scratch accumulators are negligible.
    per_row = 128 * (2 * ((ct + cn) * logit_bytes + 2 * 4)
                     + 4 * (2 * ct + cn + 12))
    budget = (vmem_bytes * 3) // 8               # ~2x headroom vs. the limit below
    max_rows = max(row_align, min(int(budget // per_row), 2048))
    if rows_total <= max_rows:
        return rows_total, vmem_bytes
    best = 0
    d = row_align
    while d <= max_rows:                          # largest aligned divisor <= max
        if rows_total % d == 0:
            best = d
        d += row_align
    if best == 0:
        # TODO(synk): support a masked ragged last tile; for now fall back to the
        # whole image when rows_total has no aligned divisor that fits VMEM.
        best = rows_total
    return best, vmem_bytes


def multi_task_focal_dice_loss(tissue_output, nuclei_output, tissue_target,
                               nuclei_target, *, gamma=2.0, dice_weight=0.5,
                               alpha=0.5, beta=0.5, smooth=1.0):
    N, Ct, H, W = tissue_output.shape
    _, Cn, _, _ = nuclei_output.shape
    assert Ct <= 63, "class partials are packed into 128 lanes"
    P = H * W
    # TODO(synk): pad the pixel axis when H*W is not a multiple of 128.
    assert P % 128 == 0, "H*W must be a multiple of 128 for lane alignment"
    rows_total = P // 128
    npix = N * P

    # Logits stay in their native dtype (bf16 stays bf16 -> half the HBM traffic).
    t_logits = tissue_output.reshape(N, Ct, rows_total, 128)
    n_logits = nuclei_output.reshape(N, Cn, rows_total, 128)

    logit_bytes = max(jnp.dtype(t_logits.dtype).itemsize,
                      jnp.dtype(n_logits.dtype).itemsize)
    # second-minor block dim alignment: f32 -> 8, bf16/f16 -> 16
    row_align = 8 if logit_bytes >= 4 else (16 if logit_bytes == 2 else 32)

    tile_rows, vmem_bytes = _pick_tile_rows(rows_total, Ct, Cn, logit_bytes,
                                            row_align)
    n_tiles = rows_total // tile_rows
    # Give the v7x megacore a parallel axis when batch alone cannot provide one.
    if N % 2 == 1 and n_tiles % 2 == 1 and tile_rows % (2 * row_align) == 0:
        tile_rows //= 2
        n_tiles *= 2
    t_out = 2 if n_tiles % 2 == 0 else 1
    t_in = n_tiles // t_out
    fold = math.gcd(tile_rows, 8)

    # int8 targets cut HBM target traffic 4x (v5e/v6e are mem-bound); only when
    # the resulting 8-bit block layout is safely tileable.
    if max(Ct, Cn) <= 127 and (tile_rows % 32 == 0 or tile_rows == rows_total):
        tgt_dtype = jnp.int8
    else:
        tgt_dtype = jnp.int32
    t_tgt = tissue_target.reshape(N, rows_total, 128).astype(tgt_dtype)
    n_tgt = nuclei_target.reshape(N, rows_total, 128).astype(tgt_dtype)
    tgt_bytes = jnp.dtype(tgt_dtype).itemsize

    def logit_map(n, to, ti):
        return (n, 0, to * t_in + ti, 0)

    def tgt_map(n, to, ti):
        return (n, to * t_in + ti, 0)

    def out_map(n, to, ti):
        return (n, to, 0, 0)

    kernel = functools.partial(_multi_loss_kernel, gamma=gamma, fold=fold)

    cost = pl.CostEstimate(
        flops=int(npix * (10 * (Ct + Cn) + 30)),
        transcendentals=int(npix * (Ct + Cn + 4)),
        bytes_accessed=int(t_logits.size * jnp.dtype(t_logits.dtype).itemsize
                           + n_logits.size * jnp.dtype(n_logits.dtype).itemsize
                           + t_tgt.size * tgt_bytes + n_tgt.size * tgt_bytes
                           + N * t_out * 8 * 128 * 4))

    # NOTE: if a bundle dump shows exposed DMA on v5e, try
    # pipeline_mode=pl.Buffered(3) on the two logits specs (VMEM now has room).
    acc = pl.pallas_call(
        kernel,
        out_shape=jax.ShapeDtypeStruct((N, t_out, 8, 128), jnp.float32),
        grid_spec=pltpu.PrefetchScalarGridSpec(
            num_scalar_prefetch=0,
            grid=(N, t_out, t_in),
            in_specs=[
                pl.BlockSpec((1, Ct, tile_rows, 128), logit_map),
                pl.BlockSpec((1, tile_rows, 128), tgt_map),
                pl.BlockSpec((1, Cn, tile_rows, 128), logit_map),
                pl.BlockSpec((1, tile_rows, 128), tgt_map),
            ],
            out_specs=pl.BlockSpec((1, 1, 8, 128), out_map),
            scratch_shapes=[
                pltpu.VMEM((fold, 128), jnp.float32),        # CE partials
                pltpu.VMEM((fold, 128), jnp.float32),        # focal partials
                pltpu.VMEM((Ct, fold, 128), jnp.float32),    # dice intersection
                pltpu.VMEM((Ct, fold, 128), jnp.float32),    # dice total
            ]),
        compiler_params=pltpu.CompilerParams(
            dimension_semantics=("parallel", "parallel", "arbitrary"),
            vmem_limit_bytes=int(vmem_bytes * 3 // 4)),
        cost_estimate=cost,
    )(t_logits, t_tgt, n_logits, n_tgt)

    # Tiny host-side finalize: combine per-(image, outer-tile) partials; the dice
    # nonlinearity is applied only after full per-image sums are assembled.
    vec = acc[:, :, 0, :]                                  # (N, t_out, 128)
    ce_sum = jnp.sum(vec[..., 0])
    focal_sum = jnp.sum(vec[..., 1])
    inter = jnp.sum(vec[..., 2:2 + Ct], axis=1)            # (N, Ct)
    total = jnp.sum(vec[..., 2 + Ct:2 + 2 * Ct], axis=1)   # (N, Ct)
    dice_score = (2.0 * inter + smooth) / (total + smooth)
    dice_loss = jnp.mean(1.0 - dice_score)                 # DiceLoss .mean()
    ce_mean = ce_sum / npix                                # nn.CrossEntropyLoss mean
    focal_mean = focal_sum / npix                          # FocalLoss 'mean'
    tissue_loss = dice_weight * dice_loss + (1.0 - dice_weight) * ce_mean
    return alpha * tissue_loss + beta * focal_mean


def _reference(to, no, tt, nt, gamma=2.0, dice_weight=0.5, alpha=0.5, beta=0.5,
               smooth=1.0):
    """Pure-JAX reference mirroring the PyTorch module."""
    Ct = to.shape[1]
    Cn = no.shape[1]
    logp = jax.nn.log_softmax(to.astype(jnp.float32), axis=1)
    oh_t = jax.nn.one_hot(tt, Ct, axis=1, dtype=jnp.float32)
    ce = -jnp.sum(oh_t * logp, axis=1)
    ce_mean = jnp.mean(ce)

    sm = jax.nn.softmax(to.astype(jnp.float32), axis=1)
    inter = jnp.sum(sm * oh_t, axis=(2, 3))
    total = jnp.sum(sm + oh_t, axis=(2, 3))
    dice_loss = jnp.mean(1.0 - (2.0 * inter + smooth) / (total + smooth))
    tissue = dice_weight * dice_loss + (1.0 - dice_weight) * ce_mean

    logp_n = jax.nn.log_softmax(no.astype(jnp.float32), axis=1)
    oh_n = jax.nn.one_hot(nt, Cn, axis=1, dtype=jnp.float32)
    ce_n = -jnp.sum(oh_n * logp_n, axis=1)
    pt = jnp.exp(-ce_n)
    focal = jnp.mean((1.0 - pt) ** gamma * ce_n)
    return alpha * tissue + beta * focal


if __name__ == "__main__":
    key = jax.random.PRNGKey(0)
    k1, k2, k3, k4 = jax.random.split(key, 4)
    N, Ct, Cn, H, W = 2, 4, 6, 16, 16

    tissue_output = jax.random.normal(k1, (N, Ct, H, W), jnp.float32)
    nuclei_output = jax.random.normal(k2, (N, Cn, H, W), jnp.float32)
    tissue_target = jax.random.randint(k3, (N, H, W), 0, Ct, jnp.int32)
    nuclei_target = jax.random.randint(k4, (N, H, W), 0, Cn, jnp.int32)

    loss = multi_task_focal_dice_loss(tissue_output, nuclei_output,
                                      tissue_target, nuclei_target)
    loss = jax.block_until_ready(loss)

    ref = _reference(tissue_output, nuclei_output, tissue_target, nuclei_target)
    assert jnp.allclose(loss, ref, rtol=1e-4, atol=1e-5), (loss, ref)
    print("KERNEL_OK")
</pallas_src>

<mosaic_0001>
module attributes {stable_mosaic.version = 11 : i64} {
  func.func @_multi_loss_kernel(%arg0: i32, %arg1: i32, %arg2: i32, %arg3: memref<1x4x2x128xf32, #tpu.memory_space<vmem>>, %arg4: memref<1x2x128xi8, #tpu.memory_space<vmem>>, %arg5: memref<1x6x2x128xf32, #tpu.memory_space<vmem>>, %arg6: memref<1x2x128xi8, #tpu.memory_space<vmem>>, %arg7: memref<1x1x8x128xf32, #tpu.memory_space<vmem>>, %arg8: memref<2x128xf32, #tpu.memory_space<vmem>>, %arg9: memref<2x128xf32, #tpu.memory_space<vmem>>, %arg10: memref<4x2x128xf32, #tpu.memory_space<vmem>>, %arg11: memref<4x2x128xf32, #tpu.memory_space<vmem>>) attributes {dimension_semantics = [#tpu.dimension_semantics<parallel>, #tpu.dimension_semantics<parallel>, #tpu.dimension_semantics<arbitrary>], iteration_bounds = array<i64: 2, 1, 1>, scalar_prefetch = 0 : i64, scratch_operands = 4 : i64, tpu.core_type = #tpu.core_type<tc>, window_params = [{transform_indices = @transform_0, window_bounds = array<i64: 1, 4, 2, 128>}, {transform_indices = @transform_1, window_bounds = array<i64: 1, 2, 128>}, {transform_indices = @transform_2, window_bounds = array<i64: 1, 6, 2, 128>}, {transform_indices = @transform_3, window_bounds = array<i64: 1, 2, 128>}, {transform_indices = @transform_4, window_bounds = array<i64: 1, 1, 8, 128>}]} {
    %c0_i32 = arith.constant 0 : i32
    %0 = arith.cmpi eq, %arg2, %c0_i32 : i32
    %1 = arith.extui %0 : i1 to i32
    %c0_i32_0 = arith.constant 0 : i32
    %2 = arith.cmpi ne, %1, %c0_i32_0 : i32
    scf.if %2 {
      %cst_95 = arith.constant 0.000000e+00 : f32
      %216 = vector.broadcast %cst_95 : f32 to vector<2x128xf32>
      %c0_96 = arith.constant 0 : index
      %c0_97 = arith.constant 0 : index
      %217 = vector.load %arg8[%c0_96, %c0_97] : memref<2x128xf32, #tpu.memory_space<vmem>>, vector<2x128xf32>
      tpu.vector_store %arg8[%c0_96, %c0_97], %216 {strides = array<i32>} : memref<2x128xf32, #tpu.memory_space<vmem>>, vector<2x128xf32>,
      %cst_98 = arith.constant 0.000000e+00 : f32
      %218 = vector.broadcast %cst_98 : f32 to vector<2x128xf32>
      %c0_99 = arith.constant 0 : index
      %c0_100 = arith.constant 0 : index
      %219 = vector.load %arg9[%c0_99, %c0_100] : memref<2x128xf32, #tpu.memory_space<vmem>>, vector<2x128xf32>
      tpu.vector_store %arg9[%c0_99, %c0_100], %218 {strides = array<i32>} : memref<2x128xf32, #tpu.memory_space<vmem>>, vector<2x128xf32>,
      %cst_101 = arith.constant 0.000000e+00 : f32
      %220 = vector.broadcast %cst_101 : f32 to vector<4x2x128xf32>
      %c0_102 = arith.constant 0 : index
      %c0_103 = arith.constant 0 : index
      %c0_104 = arith.constant 0 : index
      %221 = vector.load %arg10[%c0_102, %c0_103, %c0_104] : memref<4x2x128xf32, #tpu.memory_space<vmem>>, vector<4x2x128xf32>
      tpu.vector_store %arg10[%c0_102, %c0_103, %c0_104], %220 {strides = array<i32>} : memref<4x2x128xf32, #tpu.memory_space<vmem>>, vector<4x2x128xf32>,
      %cst_105 = arith.constant 0.000000e+00 : f32
      %222 = vector.broadcast %cst_105 : f32 to vector<4x2x128xf32>
      %c0_106 = arith.constant 0 : index
      %c0_107 = arith.constant 0 : index
      %c0_108 = arith.constant 0 : index
      %223 = vector.load %arg11[%c0_106, %c0_107, %c0_108] : memref<4x2x128xf32, #tpu.memory_space<vmem>>, vector<4x2x128xf32>
      tpu.vector_store %arg11[%c0_106, %c0_107, %c0_108], %222 {strides = array<i32>} : memref<4x2x128xf32, #tpu.memory_space<vmem>>, vector<4x2x128xf32>,
    } else {
    }
    %c0 = arith.constant 0 : index
    %c0_1 = arith.constant 0 : index
    %c0_2 = arith.constant 0 : index
    %c0_3 = arith.constant 0 : index
    %3 = vector.load %arg3[%c0, %c0_1, %c0_2, %c0_3] : memref<1x4x2x128xf32, #tpu.memory_space<vmem>>, vector<1x4x2x128xf32>
    %4 = vector.shape_cast %3 : vector<1x4x2x128xf32> to vector<4x2x128xf32>
    %c0_4 = arith.constant 0 : index
    %c0_5 = arith.constant 0 : index
    %c0_6 = arith.constant 0 : index
    %5 = vector.load %arg4[%c0_4, %c0_5, %c0_6] : memref<1x2x128xi8, #tpu.memory_space<vmem>>, vector<1x2x128xi8>
    %6 = vector.shape_cast %5 : vector<1x2x128xi8> to vector<2x128xi8>
    %7 = arith.extsi %6 : vector<2x128xi8> to vector<2x128xi32>
    %cst = arith.constant dense<0xFF800000> : vector<2x128xf32>
    %8 = vector.multi_reduction <maximumf>, %4, %cst [0] : vector<4x2x128xf32> to vector<2x128xf32>
    %9 = vector.shape_cast %8 : vector<2x128xf32> to vector<1x2x128xf32>
    %10 = vector.broadcast %9 : vector<1x2x128xf32> to vector<4x2x128xf32>
    %11 = arith.subf %4, %10 : vector<4x2x128xf32>
    %12 = math.exp %11 : vector<4x2x128xf32>
    %cst_7 = arith.constant dense<0.000000e+00> : vector<2x128xf32>
    %13 = vector.multi_reduction <add>, %12, %cst_7 [0] : vector<4x2x128xf32> to vector<2x128xf32>
    %14 = tpu.reciprocal %13 {approx = true} : vector<2x128xf32> -> vector<2x128xf32>
    %15 = arith.mulf %13, %14 : vector<2x128xf32>
    %cst_8 = arith.constant 2.000000e+00 : f32
    %16 = vector.broadcast %cst_8 : f32 to vector<2x128xf32>
    %17 = arith.subf %16, %15 : vector<2x128xf32>
    %18 = arith.mulf %14, %17 : vector<2x128xf32>
    %cst_9 = arith.constant 0.000000e+00 : f32
    %19 = vector.broadcast %cst_9 : f32 to vector<2x128xf32>
    %c0_i32_10 = arith.constant 0 : i32
    %20 = vector.broadcast %c0_i32_10 : i32 to vector<2x128xi32>
    %21 = arith.cmpi eq, %7, %20 : vector<2x128xi32>
    %22 = vector.extract_strided_slice %4 {offsets = [0, 0, 0], sizes = [1, 2, 128], strides = [1, 1, 1]} : vector<4x2x128xf32> to vector<1x2x128xf32>
    %23 = vector.shape_cast %22 : vector<1x2x128xf32> to vector<2x128xf32>
    %24 = arith.select %21, %23, %19 : vector<2x128xi1>, vector<2x128xf32>
    %25 = vector.extract_strided_slice %12 {offsets = [0, 0, 0], sizes = [1, 2, 128], strides = [1, 1, 1]} : vector<4x2x128xf32> to vector<1x2x128xf32>
    %26 = vector.shape_cast %25 : vector<1x2x128xf32> to vector<2x128xf32>
    %27 = arith.mulf %26, %18 : vector<2x128xf32>
    %c0_11 = arith.constant 0 : index
    %c0_12 = arith.constant 0 : index
    %c0_13 = arith.constant 0 : index
    %28 = vector.load %arg10[%c0_11, %c0_12, %c0_13] : memref<4x2x128xf32, #tpu.memory_space<vmem>>, vector<1x2x128xf32>
    %29 = vector.shape_cast %28 : vector<1x2x128xf32> to vector<2x128xf32>
    %cst_14 = arith.constant 0.000000e+00 : f32
    %30 = vector.broadcast %cst_14 : f32 to vector<2x128xf32>
    %31 = arith.select %21, %27, %30 : vector<2x128xi1>, vector<2x128xf32>
    %32 = arith.addf %29, %31 : vector<2x128xf32>
    %c0_15 = arith.constant 0 : index
    %c0_16 = arith.constant 0 : index
    %c0_17 = arith.constant 0 : index
    %33 = vector.load %arg10[%c0_15, %c0_16, %c0_17] : memref<4x2x128xf32, #tpu.memory_space<vmem>>, vector<1x2x128xf32>
    %34 = vector.shape_cast %33 : vector<1x2x128xf32> to vector<2x128xf32>
    %35 = vector.shape_cast %32 : vector<2x128xf32> to vector<1x2x128xf32>
    tpu.vector_store %arg10[%c0_15, %c0_16, %c0_17], %35 {strides = array<i32>} : memref<4x2x128xf32, #tpu.memory_space<vmem>>, vector<1x2x128xf32>,
    %c0_18 = arith.constant 0 : index
    %c0_19 = arith.constant 0 : index
    %c0_20 = arith.constant 0 : index
    %36 = vector.load %arg11[%c0_18, %c0_19, %c0_20] : memref<4x2x128xf32, #tpu.memory_space<vmem>>, vector<1x2x128xf32>
    %37 = vector.shape_cast %36 : vector<1x2x128xf32> to vector<2x128xf32>
    %cst_21 = arith.constant 1.000000e+00 : f32
    %cst_22 = arith.constant 0.000000e+00 : f32
    %38 = vector.broadcast %cst_21 : f32 to vector<2x128xf32>
    %39 = vector.broadcast %cst_22 : f32 to vector<2x128xf32>
    %40 = arith.select %21, %38, %39 : vector<2x128xi1>, vector<2x128xf32>
    %41 = arith.addf %27, %40 : vector<2x128xf32>
    %42 = arith.addf %37, %41 : vector<2x128xf32>
    %c0_23 = arith.constant 0 : index
    %c0_24 = arith.constant 0 : index
    %c0_25 = arith.constant 0 : index
    %43 = vector.load %arg11[%c0_23, %c0_24, %c0_25] : memref<4x2x128xf32, #tpu.memory_space<vmem>>, vector<1x2x128xf32>
    %44 = vector.shape_cast %43 : vector<1x2x128xf32> to vector<2x128xf32>
    %45 = vector.shape_cast %42 : vector<2x128xf32> to vector<1x2x128xf32>
    tpu.vector_store %arg11[%c0_23, %c0_24, %c0_25], %45 {strides = array<i32>} : memref<4x2x128xf32, #tpu.memory_space<vmem>>, vector<1x2x128xf32>,
    %c1_i32 = arith.constant 1 : i32
    %46 = vector.broadcast %c1_i32 : i32 to vector<2x128xi32>
    %47 = arith.cmpi eq, %7, %46 : vector<2x128xi32>
    %48 = vector.extract_strided_slice %4 {offsets = [1, 0, 0], sizes = [1, 2, 128], strides = [1, 1, 1]} : vector<4x2x128xf32> to vector<1x2x128xf32>
    %49 = vector.shape_cast %48 : vector<1x2x128xf32> to vector<2x128xf32>
    %50 = arith.select %47, %49, %24 : vector<2x128xi1>, vector<2x128xf32>
    %51 = vector.extract_strided_slice %12 {offsets = [1, 0, 0], sizes = [1, 2, 128], strides = [1, 1, 1]} : vector<4x2x128xf32> to vector<1x2x128xf32>
    %52 = vector.shape_cast %51 : vector<1x2x128xf32> to vector<2x128xf32>
    %53 = arith.mulf %52, %18 : vector<2x128xf32>
    %c1 = arith.constant 1 : index
    %c0_26 = arith.constant 0 : index
    %c0_27 = arith.constant 0 : index
    %54 = vector.load %arg10[%c1, %c0_26, %c0_27] : memref<4x2x128xf32, #tpu.memory_space<vmem>>, vector<1x2x128xf32>
    %55 = vector.shape_cast %54 : vector<1x2x128xf32> to vector<2x128xf32>
    %cst_28 = arith.constant 0.000000e+00 : f32
    %56 = vector.broadcast %cst_28 : f32 to vector<2x128xf32>
    %57 = arith.select %47, %53, %56 : vector<2x128xi1>, vector<2x128xf32>
    %58 = arith.addf %55, %57 : vector<2x128xf32>
    %c1_29 = arith.constant 1 : index
    %c0_30 = arith.constant 0 : index
    %c0_31 = arith.constant 0 : index
    %59 = vector.load %arg10[%c1_29, %c0_30, %c0_31] : memref<4x2x128xf32, #tpu.memory_space<vmem>>, vector<1x2x128xf32>
    %60 = vector.shape_cast %59 : vector<1x2x128xf32> to vector<2x128xf32>
    %61 = vector.shape_cast %58 : vector<2x128xf32> to vector<1x2x128xf32>
    tpu.vector_store %arg10[%c1_29, %c0_30, %c0_31], %61 {strides = array<i32>} : memref<4x2x128xf32, #tpu.memory_space<vmem>>, vector<1x2x128xf32>,
    %c1_32 = arith.constant 1 : index
    %c0_33 = arith.constant 0 : index
    %c0_34 = arith.constant 0 : index
    %62 = vector.load %arg11[%c1_32, %c0_33, %c0_34] : memref<4x2x128xf32, #tpu.memory_space<vmem>>, vector<1x2x128xf32>
    %63 = vector.shape_cast %62 : vector<1x2x128xf32> to vector<2x128xf32>
    %cst_35 = arith.constant 1.000000e+00 : f32
    %cst_36 = arith.constant 0.000000e+00 : f32
    %64 = vector.broadcast %cst_35 : f32 to vector<2x128xf32>
    %65 = vector.broadcast %cst_36 : f32 to vector<2x128xf32>
    %66 = arith.select %47, %64, %65 : vector<2x128xi1>, vector<2x128xf32>
    %67 = arith.addf %53, %66 : vector<2x128xf32>
    %68 = arith.addf %63, %67 : vector<2x128xf32>
    %c1_37 = arith.constant 1 : index
    %c0_38 = arith.constant 0 : index
    %c0_39 = arith.constant 0 : index
    %69 = vector.load %arg11[%c1_37, %c0_38, %c0_39] : memref<4x2x128xf32, #tpu.memory_space<vmem>>, vector<1x2x128xf32>
    %70 = vector.shape_cast %69 : vector<1x2x128xf32> to vector<2x128xf32>
    %71 = vector.shape_cast %68 : vector<2x128xf32> to vector<1x2x128xf32>
    tpu.vector_store %arg11[%c1_37, %c0_38, %c0_39], %71 {strides = array<i32>} : memref<4x2x128xf32, #tpu.memory_space<vmem>>, vector<1x2x128xf32>,
    %c2_i32 = arith.constant 2 : i32
    %72 = vector.broadcast %c2_i32 : i32 to vector<2x128xi32>
    %73 = arith.cmpi eq, %7, %72 : vector<2x128xi32>
    %74 = vector.extract_strided_slice %4 {offsets = [2, 0, 0], sizes = [1, 2, 128], strides = [1, 1, 1]} : vector<4x2x128xf32> to vector<1x2x128xf32>
    %75 = vector.shape_cast %74 : vector<1x2x128xf32> to vector<2x128xf32>
    %76 = arith.select %73, %75, %50 : vector<2x128xi1>, vector<2x128xf32>
    %77 = vector.extract_strided_slice %12 {offsets = [2, 0, 0], sizes = [1, 2, 128], strides = [1, 1, 1]} : vector<4x2x128xf32> to vector<1x2x128xf32>
    %78 = vector.shape_cast %77 : vector<1x2x128xf32> to vector<2x128xf32>
    %79 = arith.mulf %78, %18 : vector<2x128xf32>
    %c2 = arith.constant 2 : index
    %c0_40 = arith.constant 0 : index
    %c0_41 = arith.constant 0 : index
    %80 = vector.load %arg10[%c2, %c0_40, %c0_41] : memref<4x2x128xf32, #tpu.memory_space<vmem>>, vector<1x2x128xf32>
    %81 = vector.shape_cast %80 : vector<1x2x128xf32> to vector<2x128xf32>
    %cst_42 = arith.constant 0.000000e+00 : f32
    %82 = vector.broadcast %cst_42 : f32 to vector<2x128xf32>
    %83 = arith.select %73, %79, %82 : vector<2x128xi1>, vector<2x128xf32>
    %84 = arith.addf %81, %83 : vector<2x128xf32>
    %c2_43 = arith.constant 2 : index
    %c0_44 = arith.constant 0 : index
    %c0_45 = arith.constant 0 : index
    %85 = vector.load %arg10[%c2_43, %c0_44, %c0_45] : memref<4x2x128xf32, #tpu.memory_space<vmem>>, vector<1x2x128xf32>
    %86 = vector.shape_cast %85 : vector<1x2x128xf32> to vector<2x128xf32>
    %87 = vector.shape_cast %84 : vector<2x128xf32> to vector<1x2x128xf32>
    tpu.vector_store %arg10[%c2_43, %c0_44, %c0_45], %87 {strides = array<i32>} : memref<4x2x128xf32, #tpu.memory_space<vmem>>, vector<1x2x128xf32>,
    %c2_46 = arith.constant 2 : index
    %c0_47 = arith.constant 0 : index
    %c0_48 = arith.constant 0 : index
    %88 = vector.load %arg11[%c2_46, %c0_47, %c0_48] : memref<4x2x128xf32, #tpu.memory_space<vmem>>, vector<1x2x128xf32>
    %89 = vector.shape_cast %88 : vector<1x2x128xf32> to vector<2x128xf32>
    %cst_49 = arith.constant 1.000000e+00 : f32
    %cst_50 = arith.constant 0.000000e+00 : f32
    %90 = vector.broadcast %cst_49 : f32 to vector<2x128xf32>
    %91 = vector.broadcast %cst_50 : f32 to vector<2x128xf32>
    %92 = arith.select %73, %90, %91 : vector<2x128xi1>, vector<2x128xf32>
    %93 = arith.addf %79, %92 : vector<2x128xf32>
    %94 = arith.addf %89, %93 : vector<2x128xf32>
    %c2_51 = arith.constant 2 : index
    %c0_52 = arith.constant 0 : index
    %c0_53 = arith.constant 0 : index
    %95 = vector.load %arg11[%c2_51, %c0_52, %c0_53] : memref<4x2x128xf32, #tpu.memory_space<vmem>>, vector<1x2x128xf32>
    %96 = vector.shape_cast %95 : vector<1x2x128xf32> to vector<2x128xf32>
    %97 = vector.shape_cast %94 : vector<2x128xf32> to vector<1x2x128xf32>
    tpu.vector_store %arg11[%c2_51, %c0_52, %c0_53], %97 {strides = array<i32>} : memref<4x2x128xf32, #tpu.memory_space<vmem>>, vector<1x2x128xf32>,
    %c3_i32 = arith.constant 3 : i32
    %98 = vector.broadcast %c3_i32 : i32 to vector<2x128xi32>
    %99 = arith.cmpi eq, %7, %98 : vector<2x128xi32>
    %100 = vector.extract_strided_slice %4 {offsets = [3, 0, 0], sizes = [1, 2, 128], strides = [1, 1, 1]} : vector<4x2x128xf32> to vector<1x2x128xf32>
    %101 = vector.shape_cast %100 : vector<1x2x128xf32> to vector<2x128xf32>
    %102 = arith.select %99, %101, %76 : vector<2x128xi1>, vector<2x128xf32>
    %103 = vector.extract_strided_slice %12 {offsets = [3, 0, 0], sizes = [1, 2, 128], strides = [1, 1, 1]} : vector<4x2x128xf32> to vector<1x2x128xf32>
    %104 = vector.shape_cast %103 : vector<1x2x128xf32> to vector<2x128xf32>
    %105 = arith.mulf %104, %18 : vector<2x128xf32>
    %c3 = arith.constant 3 : index
    %c0_54 = arith.constant 0 : index
    %c0_55 = arith.constant 0 : index
    %106 = vector.load %arg10[%c3, %c0_54, %c0_55] : memref<4x2x128xf32, #tpu.memory_space<vmem>>, vector<1x2x128xf32>
    %107 = vector.shape_cast %106 : vector<1x2x128xf32> to vector<2x128xf32>
    %cst_56 = arith.constant 0.000000e+00 : f32
    %108 = vector.broadcast %cst_56 : f32 to vector<2x128xf32>
    %109 = arith.select %99, %105, %108 : vector<2x128xi1>, vector<2x128xf32>
    %110 = arith.addf %107, %109 : vector<2x128xf32>
    %c3_57 = arith.constant 3 : index
    %c0_58 = arith.constant 0 : index
    %c0_59 = arith.constant 0 : index
    %111 = vector.load %arg10[%c3_57, %c0_58, %c0_59] : memref<4x2x128xf32, #tpu.memory_space<vmem>>, vector<1x2x128xf32>
    %112 = vector.shape_cast %111 : vector<1x2x128xf32> to vector<2x128xf32>
    %113 = vector.shape_cast %110 : vector<2x128xf32> to vector<1x2x128xf32>
    tpu.vector_store %arg10[%c3_57, %c0_58, %c0_59], %113 {strides = array<i32>} : memref<4x2x128xf32, #tpu.memory_space<vmem>>, vector<1x2x128xf32>,
    %c3_60 = arith.constant 3 : index
    %c0_61 = arith.constant 0 : index
    %c0_62 = arith.constant 0 : index
    %114 = vector.load %arg11[%c3_60, %c0_61, %c0_62] : memref<4x2x128xf32, #tpu.memory_space<vmem>>, vector<1x2x128xf32>
    %115 = vector.shape_cast %114 : vector<1x2x128xf32> to vector<2x128xf32>
    %cst_63 = arith.constant 1.000000e+00 : f32
    %cst_64 = arith.constant 0.000000e+00 : f32
    %116 = vector.broadcast %cst_63 : f32 to vector<2x128xf32>
    %117 = vector.broadcast %cst_64 : f32 to vector<2x128xf32>
    %118 = arith.select %99, %116, %117 : vector<2x128xi1>, vector<2x128xf32>
    %119 = arith.addf %105, %118 : vector<2x128xf32>
    %120 = arith.addf %115, %119 : vector<2x128xf32>
    %c3_65 = arith.constant 3 : index
    %c0_66 = arith.constant 0 : index
    %c0_67 = arith.constant 0 : index
    %121 = vector.load %arg11[%c3_65, %c0_66, %c0_67] : memref<4x2x128xf32, #tpu.memory_space<vmem>>, vector<1x2x128xf32>
    %122 = vector.shape_cast %121 : vector<1x2x128xf32> to vector<2x128xf32>
    %123 = vector.shape_cast %120 : vector<2x128xf32> to vector<1x2x128xf32>
    tpu.vector_store %arg11[%c3_65, %c0_66, %c0_67], %123 {strides = array<i32>} : memref<4x2x128xf32, #tpu.memory_space<vmem>>, vector<1x2x128xf32>,
    %c0_68 = arith.constant 0 : index
    %c0_69 = arith.constant 0 : index
    %124 = vector.load %arg8[%c0_68, %c0_69] : memref<2x128xf32, #tpu.memory_space<vmem>>, vector<2x128xf32>
    %125 = math.log %13 : vector<2x128xf32>
    %126 = arith.addf %8, %125 : vector<2x128xf32>
    %127 = arith.subf %126, %102 : vector<2x128xf32>
    %128 = arith.addf %124, %127 : vector<2x128xf32>
    %c0_70 = arith.constant 0 : index
    %c0_71 = arith.constant 0 : index
    %129 = vector.load %arg8[%c0_70, %c0_71] : memref<2x128xf32, #tpu.memory_space<vmem>>, vector<2x128xf32>
    tpu.vector_store %arg8[%c0_70, %c0_71], %128 {strides = array<i32>} : memref<2x128xf32, #tpu.memory_space<vmem>>, vector<2x128xf32>,
    %c0_72 = arith.constant 0 : index
    %c0_73 = arith.constant 0 : index
    %c0_74 = arith.constant 0 : index
    %c0_75 = arith.constant 0 : index
    %130 = vector.load %arg5[%c0_72, %c0_73, %c0_74, %c0_75] : memref<1x6x2x128xf32, #tpu.memory_space<vmem>>, vector<1x6x2x128xf32>
    %131 = vector.shape_cast %130 : vector<1x6x2x128xf32> to vector<6x2x128xf32>
    %c0_76 = arith.constant 0 : index
    %c0_77 = arith.constant 0 : index
    %c0_78 = arith.constant 0 : index
    %132 = vector.load %arg6[%c0_76, %c0_77, %c0_78] : memref<1x2x128xi8, #tpu.memory_space<vmem>>, vector<1x2x128xi8>
    %133 = vector.shape_cast %132 : vector<1x2x128xi8> to vector<2x128xi8>
    %134 = arith.extsi %133 : vector<2x128xi8> to vector<2x128xi32>
    %cst_79 = arith.constant dense<0xFF800000> : vector<2x128xf32>
    %135 = vector.multi_reduction <maximumf>, %131, %cst_79 [0] : vector<6x2x128xf32> to vector<2x128xf32>
    %cst_80 = arith.constant 0.000000e+00 : f32
    %136 = vector.broadcast %cst_80 : f32 to vector<2x128xf32>
    %cst_81 = arith.constant 0.000000e+00 : f32
    %137 = vector.broadcast %cst_81 : f32 to vector<2x128xf32>
    %138 = vector.extract_strided_slice %131 {offsets = [0, 0, 0], sizes = [1, 2, 128], strides = [1, 1, 1]} : vector<6x2x128xf32> to vector<1x2x128xf32>
    %139 = vector.shape_cast %138 : vector<1x2x128xf32> to vector<2x128xf32>
    %140 = arith.subf %139, %135 : vector<2x128xf32>
    %141 = math.exp %140 : vector<2x128xf32>
    %142 = arith.addf %136, %141 : vector<2x128xf32>
    %c0_i32_82 = arith.constant 0 : i32
    %143 = vector.broadcast %c0_i32_82 : i32 to vector<2x128xi32>
    %144 = arith.cmpi eq, %134, %143 : vector<2x128xi32>
    %145 = vector.extract_strided_slice %131 {offsets = [0, 0, 0], sizes = [1, 2, 128], strides = [1, 1, 1]} : vector<6x2x128xf32> to vector<1x2x128xf32>
    %146 = vector.shape_cast %145 : vector<1x2x128xf32> to vector<2x128xf32>
    %147 = arith.select %144, %146, %137 : vector<2x128xi1>, vector<2x128xf32>
    %148 = vector.extract_strided_slice %131 {offsets = [1, 0, 0], sizes = [1, 2, 128], strides = [1, 1, 1]} : vector<6x2x128xf32> to vector<1x2x128xf32>
    %149 = vector.shape_cast %148 : vector<1x2x128xf32> to vector<2x128xf32>
    %150 = arith.subf %149, %135 : vector<2x128xf32>
    %151 = math.exp %150 : vector<2x128xf32>
    %152 = arith.addf %142, %151 : vector<2x128xf32>
    %c1_i32_83 = arith.constant 1 : i32
    %153 = vector.broadcast %c1_i32_83 : i32 to vector<2x128xi32>
    %154 = arith.cmpi eq, %134, %153 : vector<2x128xi32>
    %155 = vector.extract_strided_slice %131 {offsets = [1, 0, 0], sizes = [1, 2, 128], strides = [1, 1, 1]} : vector<6x2x128xf32> to vector<1x2x128xf32>
    %156 = vector.shape_cast %155 : vector<1x2x128xf32> to vector<2x128xf32>
    %157 = arith.select %154, %156, %147 : vector<2x128xi1>, vector<2x128xf32>
    %158 = vector.extract_strided_slice %131 {offsets = [2, 0, 0], sizes = [1, 2, 128], strides = [1, 1, 1]} : vector<6x2x128xf32> to vector<1x2x128xf32>
    %159 = vector.shape_cast %158 : vector<1x2x128xf32> to vector<2x128xf32>
    %160 = arith.subf %159, %135 : vector<2x128xf32>
    %161 = math.exp %160 : vector<2x128xf32>
    %162 = arith.addf %152, %161 : vector<2x128xf32>
    %c2_i32_84 = arith.constant 2 : i32
    %163 = vector.broadcast %c2_i32_84 : i32 to vector<2x128xi32>
    %164 = arith.cmpi eq, %134, %163 : vector<2x128xi32>
    %165 = vector.extract_strided_slice %131 {offsets = [2, 0, 0], sizes = [1, 2, 128], strides = [1, 1, 1]} : vector<6x2x128xf32> to vector<1x2x128xf32>
    %166 = vector.shape_cast %165 : vector<1x2x128xf32> to vector<2x128xf32>
    %167 = arith.select %164, %166, %157 : vector<2x128xi1>, vector<2x128xf32>
    %168 = vector.extract_strided_slice %131 {offsets = [3, 0, 0], sizes = [1, 2, 128], strides = [1, 1, 1]} : vector<6x2x128xf32> to vector<1x2x128xf32>
    %169 = vector.shape_cast %168 : vector<1x2x128xf32> to vector<2x128xf32>
    %170 = arith.subf %169, %135 : vector<2x128xf32>
    %171 = math.exp %170 : vector<2x128xf32>
    %172 = arith.addf %162, %171 : vector<2x128xf32>
    %c3_i32_85 = arith.constant 3 : i32
    %173 = vector.broadcast %c3_i32_85 : i32 to vector<2x128xi32>
    %174 = arith.cmpi eq, %134, %173 : vector<2x128xi32>
    %175 = vector.extract_strided_slice %131 {offsets = [3, 0, 0], sizes = [1, 2, 128], strides = [1, 1, 1]} : vector<6x2x128xf32> to vector<1x2x128xf32>
    %176 = vector.shape_cast %175 : vector<1x2x128xf32> to vector<2x128xf32>
    %177 = arith.select %174, %176, %167 : vector<2x128xi1>, vector<2x128xf32>
    %178 = vector.extract_strided_slice %131 {offsets = [4, 0, 0], sizes = [1, 2, 128], strides = [1, 1, 1]} : vector<6x2x128xf32> to vector<1x2x128xf32>
    %179 = vector.shape_cast %178 : vector<1x2x128xf32> to vector<2x128xf32>
    %180 = arith.subf %179, %135 : vector<2x128xf32>
    %181 = math.exp %180 : vector<2x128xf32>
    %182 = arith.addf %172, %181 : vector<2x128xf32>
    %c4_i32 = arith.constant 4 : i32
    %183 = vector.broadcast %c4_i32 : i32 to vector<2x128xi32>
    %184 = arith.cmpi eq, %134, %183 : vector<2x128xi32>
    %185 = vector.extract_strided_slice %131 {offsets = [4, 0, 0], sizes = [1, 2, 128], strides = [1, 1, 1]} : vector<6x2x128xf32> to vector<1x2x128xf32>
    %186 = vector.shape_cast %185 : vector<1x2x128xf32> to vector<2x128xf32>
    %187 = arith.select %184, %186, %177 : vector<2x128xi1>, vector<2x128xf32>
    %188 = vector.extract_strided_slice %131 {offsets = [5, 0, 0], sizes = [1, 2, 128], strides = [1, 1, 1]} : vector<6x2x128xf32> to vector<1x2x128xf32>
    %189 = vector.shape_cast %188 : vector<1x2x128xf32> to vector<2x128xf32>
    %190 = arith.subf %189, %135 : vector<2x128xf32>
    %191 = math.exp %190 : vector<2x128xf32>
    %192 = arith.addf %182, %191 : vector<2x128xf32>
    %c5_i32 = arith.constant 5 : i32
    %193 = vector.broadcast %c5_i32 : i32 to vector<2x128xi32>
    %194 = arith.cmpi eq, %134, %193 : vector<2x128xi32>
    %195 = vector.extract_strided_slice %131 {offsets = [5, 0, 0], sizes = [1, 2, 128], strides = [1, 1, 1]} : vector<6x2x128xf32> to vector<1x2x128xf32>
    %196 = vector.shape_cast %195 : vector<1x2x128xf32> to vector<2x128xf32>
    %197 = arith.select %194, %196, %187 : vector<2x128xi1>, vector<2x128xf32>
    %198 = math.log %192 : vector<2x128xf32>
    %199 = arith.addf %135, %198 : vector<2x128xf32>
    %200 = arith.subf %199, %197 : vector<2x128xf32>
    %cst_86 = arith.constant 0.000000e+00 : f32
    %201 = vector.broadcast %cst_86 : f32 to vector<2x128xf32>
    %202 = arith.subf %201, %200 : vector<2x128xf32>
    %203 = math.exp %202 : vector<2x128xf32>
    %cst_87 = arith.constant 1.000000e+00 : f32
    %204 = vector.broadcast %cst_87 : f32 to vector<2x128xf32>
    %205 = arith.subf %204, %203 : vector<2x128xf32>
    %cst_88 = arith.constant 0.000000e+00 : f32
    %206 = vector.broadcast %cst_88 : f32 to vector<2x128xf32>
    %207 = arith.maximumf %205, %206 : vector<2x128xf32>
    %208 = arith.mulf %207, %207 : vector<2x128xf32>
    %c0_89 = arith.constant 0 : index
    %c0_90 = arith.constant 0 : index
    %209 = vector.load %arg9[%c0_89, %c0_90] : memref<2x128xf32, #tpu.memory_space<vmem>>, vector<2x128xf32>
    %210 = arith.mulf %208, %200 : vector<2x128xf32>
    %211 = arith.addf %209, %210 : vector<2x128xf32>
    %c0_91 = arith.constant 0 : index
    %c0_92 = arith.constant 0 : index
    %212 = vector.load %arg9[%c0_91, %c0_92] : memref<2x128xf32, #tpu.memory_space<vmem>>, vector<2x128xf32>
    tpu.vector_store %arg9[%c0_91, %c0_92], %211 {strides = array<i32>} : memref<2x128xf32, #tpu.memory_space<vmem>>, vector<2x128xf32>,
    %c0_i32_93 = arith.constant 0 : i32
    %213 = arith.cmpi eq, %arg2, %c0_i32_93 : i32
    %214 = arith.extui %213 : i1 to i32
    %c0_i32_94 = arith.constant 0 : i32
    %215 = arith.cmpi ne, %214, %c0_i32_94 : i32
    scf.if %215 {
      %216 = tpu.iota {dimensions = array<i32: 1>} : vector<8x128xi32>
      %c0_i32_95 = arith.constant 0 : i32
      %217 = vector.broadcast %c0_i32_95 : i32 to vector<8x128xi32>
      %218 = arith.cmpi eq, %216, %217 : vector<8x128xi32>
      %c0_96 = arith.constant 0 : index
      %c0_97 = arith.constant 0 : index
      %219 = vector.load %arg8[%c0_96, %c0_97] : memref<2x128xf32, #tpu.memory_space<vmem>>, vector<2x128xf32>
      %220 = vector.shape_cast %219 : vector<2x128xf32> to vector<1x2x128xf32>
      %cst_98 = arith.constant dense<0.000000e+00> : vector<1xf32>
      %221 = vector.multi_reduction <add>, %220, %cst_98 [1, 2] : vector<1x2x128xf32> to vector<1xf32>
      %222 = vector.shape_cast %221 : vector<1xf32> to vector<1x1x1xf32>
      %223 = vector.extract %222[0, 0, 0] : f32 from vector<1x1x1xf32>
      %cst_99 = arith.constant 0.000000e+00 : f32
      %224 = vector.broadcast %223 : f32 to vector<8x128xf32>
      %225 = vector.broadcast %cst_99 : f32 to vector<8x128xf32>
      %226 = arith.select %218, %224, %225 : vector<8x128xi1>, vector<8x128xf32>
      %c1_i32_100 = arith.constant 1 : i32
      %227 = vector.broadcast %c1_i32_100 : i32 to vector<8x128xi32>
      %228 = arith.cmpi eq, %216, %227 : vector<8x128xi32>
      %c0_101 = arith.constant 0 : index
      %c0_102 = arith.constant 0 : index
      %229 = vector.load %arg9[%c0_101, %c0_102] : memref<2x128xf32, #tpu.memory_space<vmem>>, vector<2x128xf32>
      %230 = vector.shape_cast %229 : vector<2x128xf32> to vector<1x2x128xf32>
      %cst_103 = arith.constant dense<0.000000e+00> : vector<1xf32>
      %231 = vector.multi_reduction <add>, %230, %cst_103 [1, 2] : vector<1x2x128xf32> to vector<1xf32>
      %232 = vector.shape_cast %231 : vector<1xf32> to vector<1x1x1xf32>
      %233 = vector.extract %232[0, 0, 0] : f32 from vector<1x1x1xf32>
      %cst_104 = arith.constant 0.000000e+00 : f32
      %234 = vector.broadcast %233 : f32 to vector<8x128xf32>
      %235 = vector.broadcast %cst_104 : f32 to vector<8x128xf32>
      %236 = arith.select %228, %234, %235 : vector<8x128xi1>, vector<8x128xf32>
      %237 = arith.addf %226, %236 : vector<8x128xf32>
      %c2_i32_105 = arith.constant 2 : i32
      %238 = vector.broadcast %c2_i32_105 : i32 to vector<8x128xi32>
      %239 = arith.cmpi eq, %216, %238 : vector<8x128xi32>
      %c0_106 = arith.constant 0 : index
      %c0_107 = arith.constant 0 : index
      %c0_108 = arith.constant 0 : index
      %240 = vector.load %arg10[%c0_106, %c0_107, %c0_108] : memref<4x2x128xf32, #tpu.memory_space<vmem>>, vector<1x2x128xf32>
      %241 = vector.shape_cast %240 : vector<1x2x128xf32> to vector<2x128xf32>
      %242 = vector.shape_cast %241 : vector<2x128xf32> to vector<1x2x128xf32>
      %cst_109 = arith.constant dense<0.000000e+00> : vector<1xf32>
      %243 = vector.multi_reduction <add>, %242, %cst_109 [1, 2] : vector<1x2x128xf32> to vector<1xf32>
      %244 = vector.shape_cast %243 : vector<1xf32> to vector<1x1x1xf32>
      %245 = vector.extract %244[0, 0, 0] : f32 from vector<1x1x1xf32>
      %cst_110 = arith.constant 0.000000e+00 : f32
      %246 = vector.broadcast %245 : f32 to vector<8x128xf32>
      %247 = vector.broadcast %cst_110 : f32 to vector<8x128xf32>
      %248 = arith.select %239, %246, %247 : vector<8x128xi1>, vector<8x128xf32>
      %249 = arith.addf %237, %248 : vector<8x128xf32>
      %c6_i32 = arith.constant 6 : i32
      %250 = vector.broadcast %c6_i32 : i32 to vector<8x128xi32>
      %251 = arith.cmpi eq, %216, %250 : vector<8x128xi32>
      %c0_111 = arith.constant 0 : index
      %c0_112 = arith.constant 0 : index
      %c0_113 = arith.constant 0 : index
      %252 = vector.load %arg11[%c0_111, %c0_112, %c0_113] : memref<4x2x128xf32, #tpu.memory_space<vmem>>, vector<1x2x128xf32>
      %253 = vector.shape_cast %252 : vector<1x2x128xf32> to vector<2x128xf32>
      %254 = vector.shape_cast %253 : vector<2x128xf32> to vector<1x2x128xf32>
      %cst_114 = arith.constant dense<0.000000e+00> : vector<1xf32>
      %255 = vector.multi_reduction <add>, %254, %cst_114 [1, 2] : vector<1x2x128xf32> to vector<1xf32>
      %256 = vector.shape_cast %255 : vector<1xf32> to vector<1x1x1xf32>
      %257 = vector.extract %256[0, 0, 0] : f32 from vector<1x1x1xf32>
      %cst_115 = arith.constant 0.000000e+00 : f32
      %258 = vector.broadcast %257 : f32 to vector<8x128xf32>
      %259 = vector.broadcast %cst_115 : f32 to vector<8x128xf32>
      %260 = arith.select %251, %258, %259 : vector<8x128xi1>, vector<8x128xf32>
      %261 = arith.addf %249, %260 : vector<8x128xf32>
      %c3_i32_116 = arith.constant 3 : i32
      %262 = vector.broadcast %c3_i32_116 : i32 to vector<8x128xi32>
      %263 = arith.cmpi eq, %216, %262 : vector<8x128xi32>
      %c1_117 = arith.constant 1 : index
      %c0_118 = arith.constant 0 : index
      %c0_119 = arith.constant 0 : index
      %264 = vector.load %arg10[%c1_117, %c0_118, %c0_119] : memref<4x2x128xf32, #tpu.memory_space<vmem>>, vector<1x2x128xf32>
      %265 = vector.shape_cast %264 : vector<1x2x128xf32> to vector<2x128xf32>
      %266 = vector.shape_cast %265 : vector<2x128xf32> to vector<1x2x128xf32>
      %cst_120 = arith.constant dense<0.000000e+00> : vector<1xf32>
      %267 = vector.multi_reduction <add>, %266, %cst_120 [1, 2] : vector<1x2x128xf32> to vector<1xf32>
      %268 = vector.shape_cast %267 : vector<1xf32> to vector<1x1x1xf32>
      %269 = vector.extract %268[0, 0, 0] : f32 from vector<1x1x1xf32>
      %cst_121 = arith.constant 0.000000e+00 : f32
      %270 = vector.broadcast %269 : f32 to vector<8x128xf32>
      %271 = vector.broadcast %cst_121 : f32 to vector<8x128xf32>
      %272 = arith.select %263, %270, %271 : vector<8x128xi1>, vector<8x128xf32>
      %273 = arith.addf %261, %272 : vector<8x128xf32>
      %c7_i32 = arith.constant 7 : i32
      %274 = vector.broadcast %c7_i32 : i32 to vector<8x128xi32>
      %275 = arith.cmpi eq, %216, %274 : vector<8x128xi32>
      %c1_122 = arith.constant 1 : index
      %c0_123 = arith.constant 0 : index
      %c0_124 = arith.constant 0 : index
      %276 = vector.load %arg11[%c1_122, %c0_123, %c0_124] : memref<4x2x128xf32, #tpu.memory_space<vmem>>, vector<1x2x128xf32>
      %277 = vector.shape_cast %276 : vector<1x2x128xf32> to vector<2x128xf32>
      %278 = vector.shape_cast %277 : vector<2x128xf32> to vector<1x2x128xf32>
      %cst_125 = arith.constant dense<0.000000e+00> : vector<1xf32>
      %279 = vector.multi_reduction <add>, %278, %cst_125 [1, 2] : vector<1x2x128xf32> to vector<1xf32>
      %280 = vector.shape_cast %279 : vector<1xf32> to vector<1x1x1xf32>
      %281 = vector.extract %280[0, 0, 0] : f32 from vector<1x1x1xf32>
      %cst_126 = arith.constant 0.000000e+00 : f32
      %282 = vector.broadcast %281 : f32 to vector<8x128xf32>
      %283 = vector.broadcast %cst_126 : f32 to vector<8x128xf32>
      %284 = arith.select %275, %282, %283 : vector<8x128xi1>, vector<8x128xf32>
      %285 = arith.addf %273, %284 : vector<8x128xf32>
      %c4_i32_127 = arith.constant 4 : i32
      %286 = vector.broadcast %c4_i32_127 : i32 to vector<8x128xi32>
      %287 = arith.cmpi eq, %216, %286 : vector<8x128xi32>
      %c2_128 = arith.constant 2 : index
      %c0_129 = arith.constant 0 : index
      %c0_130 = arith.constant 0 : index
      %288 = vector.load %arg10[%c2_128, %c0_129, %c0_130] : memref<4x2x128xf32, #tpu.memory_space<vmem>>, vector<1x2x128xf32>
      %289 = vector.shape_cast %288 : vector<1x2x128xf32> to vector<2x128xf32>
      %290 = vector.shape_cast %289 : vector<2x128xf32> to vector<1x2x128xf32>
      %cst_131 = arith.constant dense<0.000000e+00> : vector<1xf32>
      %291 = vector.multi_reduction <add>, %290, %cst_131 [1, 2] : vector<1x2x128xf32> to vector<1xf32>
      %292 = vector.shape_cast %291 : vector<1xf32> to vector<1x1x1xf32>
      %293 = vector.extract %292[0, 0, 0] : f32 from vector<1x1x1xf32>
      %cst_132 = arith.constant 0.000000e+00 : f32
      %294 = vector.broadcast %293 : f32 to vector<8x128xf32>
      %295 = vector.broadcast %cst_132 : f32 to vector<8x128xf32>
      %296 = arith.select %287, %294, %295 : vector<8x128xi1>, vector<8x128xf32>
      %297 = arith.addf %285, %296 : vector<8x128xf32>
      %c8_i32 = arith.constant 8 : i32
      %298 = vector.broadcast %c8_i32 : i32 to vector<8x128xi32>
      %299 = arith.cmpi eq, %216, %298 : vector<8x128xi32>
      %c2_133 = arith.constant 2 : index
      %c0_134 = arith.constant 0 : index
      %c0_135 = arith.constant 0 : index
      %300 = vector.load %arg11[%c2_133, %c0_134, %c0_135] : memref<4x2x128xf32, #tpu.memory_space<vmem>>, vector<1x2x128xf32>
      %301 = vector.shape_cast %300 : vector<1x2x128xf32> to vector<2x128xf32>
      %302 = vector.shape_cast %301 : vector<2x128xf32> to vector<1x2x128xf32>
      %cst_136 = arith.constant dense<0.000000e+00> : vector<1xf32>
      %303 = vector.multi_reduction <add>, %302, %cst_136 [1, 2] : vector<1x2x128xf32> to vector<1xf32>
      %304 = vector.shape_cast %303 : vector<1xf32> to vector<1x1x1xf32>
      %305 = vector.extract %304[0, 0, 0] : f32 from vector<1x1x1xf32>
      %cst_137 = arith.constant 0.000000e+00 : f32
      %306 = vector.broadcast %305 : f32 to vector<8x128xf32>
      %307 = vector.broadcast %cst_137 : f32 to vector<8x128xf32>
      %308 = arith.select %299, %306, %307 : vector<8x128xi1>, vector<8x128xf32>
      %309 = arith.addf %297, %308 : vector<8x128xf32>
      %c5_i32_138 = arith.constant 5 : i32
      %310 = vector.broadcast %c5_i32_138 : i32 to vector<8x128xi32>
      %311 = arith.cmpi eq, %216, %310 : vector<8x128xi32>
      %c3_139 = arith.constant 3 : index
      %c0_140 = arith.constant 0 : index
      %c0_141 = arith.constant 0 : index
      %312 = vector.load %arg10[%c3_139, %c0_140, %c0_141] : memref<4x2x128xf32, #tpu.memory_space<vmem>>, vector<1x2x128xf32>
      %313 = vector.shape_cast %312 : vector<1x2x128xf32> to vector<2x128xf32>
      %314 = vector.shape_cast %313 : vector<2x128xf32> to vector<1x2x128xf32>
      %cst_142 = arith.constant dense<0.000000e+00> : vector<1xf32>
      %315 = vector.multi_reduction <add>, %314, %cst_142 [1, 2] : vector<1x2x128xf32> to vector<1xf32>
      %316 = vector.shape_cast %315 : vector<1xf32> to vector<1x1x1xf32>
      %317 = vector.extract %316[0, 0, 0] : f32 from vector<1x1x1xf32>
      %cst_143 = arith.constant 0.000000e+00 : f32
      %318 = vector.broadcast %317 : f32 to vector<8x128xf32>
      %319 = vector.broadcast %cst_143 : f32 to vector<8x128xf32>
      %320 = arith.select %311, %318, %319 : vector<8x128xi1>, vector<8x128xf32>
      %321 = arith.addf %309, %320 : vector<8x128xf32>
      %c9_i32 = arith.constant 9 : i32
      %322 = vector.broadcast %c9_i32 : i32 to vector<8x128xi32>
      %323 = arith.cmpi eq, %216, %322 : vector<8x128xi32>
      %c3_144 = arith.constant 3 : index
      %c0_145 = arith.constant 0 : index
      %c0_146 = arith.constant 0 : index
      %324 = vector.load %arg11[%c3_144, %c0_145, %c0_146] : memref<4x2x128xf32, #tpu.memory_space<vmem>>, vector<1x2x128xf32>
      %325 = vector.shape_cast %324 : vector<1x2x128xf32> to vector<2x128xf32>
      %326 = vector.shape_cast %325 : vector<2x128xf32> to vector<1x2x128xf32>
      %cst_147 = arith.constant dense<0.000000e+00> : vector<1xf32>
      %327 = vector.multi_reduction <add>, %326, %cst_147 [1, 2] : vector<1x2x128xf32> to vector<1xf32>
      %328 = vector.shape_cast %327 : vector<1xf32> to vector<1x1x1xf32>
      %329 = vector.extract %328[0, 0, 0] : f32 from vector<1x1x1xf32>
      %cst_148 = arith.constant 0.000000e+00 : f32
      %330 = vector.broadcast %329 : f32 to vector<8x128xf32>
      %331 = vector.broadcast %cst_148 : f32 to vector<8x128xf32>
      %332 = arith.select %323, %330, %331 : vector<8x128xi1>, vector<8x128xf32>
      %333 = arith.addf %321, %332 : vector<8x128xf32>
      %c0_149 = arith.constant 0 : index
      %c0_150 = arith.constant 0 : index
      %c0_151 = arith.constant 0 : index
      %c0_152 = arith.constant 0 : index
      %334 = vector.load %arg7[%c0_149, %c0_150, %c0_151, %c0_152] : memref<1x1x8x128xf32, #tpu.memory_space<vmem>>, vector<1x1x8x128xf32>
      %335 = vector.shape_cast %334 : vector<1x1x8x128xf32> to vector<8x128xf32>
      %336 = vector.shape_cast %333 : vector<8x128xf32> to vector<1x1x8x128xf32>
      tpu.vector_store %arg7[%c0_149, %c0_150, %c0_151, %c0_152], %336 {strides = array<i32>} : memref<1x1x8x128xf32, #tpu.memory_space<vmem>>, vector<1x1x8x128xf32>,
    } else {
    }
    return
  }
  func.func @transform_0(%arg0: i32, %arg1: i32, %arg2: i32) -> (i32, i32, i32, i32) {
    %c1_i32 = arith.constant 1 : i32
    %0 = arith.muli %arg1, %c1_i32 : i32
    %1 = arith.addi %0, %arg2 : i32
    %c0_i32 = arith.constant 0 : i32
    %c0_i32_0 = arith.constant 0 : i32
    %c0_i32_1 = arith.constant 0 : i32
    return %arg0, %c0_i32, %1, %c0_i32_0 : i32, i32, i32, i32
  }
  func.func @transform_1(%arg0: i32, %arg1: i32, %arg2: i32) -> (i32, i32, i32) {
    %c1_i32 = arith.constant 1 : i32
    %0 = arith.muli %arg1, %c1_i32 : i32
    %1 = arith.addi %0, %arg2 : i32
    %c0_i32 = arith.constant 0 : i32
    %c0_i32_0 = arith.constant 0 : i32
    return %arg0, %1, %c0_i32 : i32, i32, i32
  }
  func.func @transform_2(%arg0: i32, %arg1: i32, %arg2: i32) -> (i32, i32, i32, i32) {
    %c1_i32 = arith.constant 1 : i32
    %0 = arith.muli %arg1, %c1_i32 : i32
    %1 = arith.addi %0, %arg2 : i32
    %c0_i32 = arith.constant 0 : i32
    %c0_i32_0 = arith.constant 0 : i32
    %c0_i32_1 = arith.constant 0 : i32
    return %arg0, %c0_i32, %1, %c0_i32_0 : i32, i32, i32, i32
  }
  func.func @transform_3(%arg0: i32, %arg1: i32, %arg2: i32) -> (i32, i32, i32) {
    %c1_i32 = arith.constant 1 : i32
    %0 = arith.muli %arg1, %c1_i32 : i32
    %1 = arith.addi %0, %arg2 : i32
    %c0_i32 = arith.constant 0 : i32
    %c0_i32_0 = arith.constant 0 : i32
    return %arg0, %1, %c0_i32 : i32, i32, i32
  }
  func.func @transform_4(%arg0: i32, %arg1: i32, %arg2: i32) -> (i32, i32, i32, i32) {
    %c0_i32 = arith.constant 0 : i32
    %c0_i32_0 = arith.constant 0 : i32
    %c0_i32_1 = arith.constant 0 : i32
    return %arg0, %arg1, %c0_i32, %c0_i32_0 : i32, i32, i32, i32
  }
}

</mosaic_0001>

<bundles_post_ra>
// kernel: tpu_custom_call.1
= control target key start
LH: loop header
LB: loop body
LE: loop exit
PB: predicated region body
PF: predicated region fallthrough
CT: control target
= control target key end

     0   :  { %s1545_s0 = inlined_call_operand.hbm [shape: f32[2,4,2,128], index: 0, kind: input, shape index: {}]   ;;  %s1546_s1 = inlined_call_operand.hbm [shape: s8[2,2,128], index: 1, kind: input, shape index: {}]   ;;  %s1547_s2 = inlined_call_operand.hbm [shape: f32[2,6,2,128], index: 2, kind: input, shape index: {}]   ;;  %s1548_s3 = inlined_call_operand.vmem [shape: s8[2,2,128], index: 3, kind: input, shape index: {}]   ;;  %s1549_s4 = inlined_call_operand.hbm [shape: f32[2,1,8,128], index: 4, kind: output, shape index: {}]  }
   0x1   :  { %1556 = sst [smem:[#allocation22_spill]] %s1546_s1 }
   0x2   :  { %9 = vsyncpa [#allocation7], 0 }
   0x3   :  { %11 = vsyncpa [#allocation7 + $0x1], 0 }
   0x4   :  { %12 = vsyncpa [#allocation10], 0 }
   0x5   :  { %14 = vsyncpa [#allocation10 + $0x1], 0 }
   0x6   :  { %15 = vsyncpa [#allocation8], 0 }
   0x7   :  { %17 = vsyncpa [#allocation8 + $0x1], 0  ;;  %s1208_s15 = smov 0   ;;  %s1210_s16 = smov 0  }
   0x8   :  { %s1212_s17 = smov 0   ;;  %s1214_s18 = smov 0  }
   0x9   :  { %s1216_s19 = smov 0   ;;  %s1218_s20 = smov 0  }
   0xa LB: > { %1557 = sst [smem:[#allocation16_spill]] %s1158_s15  ;;  %s1239_s21 = sadd.s32 4294967295, %s1178_s20   ;;  %s1178_s20 = sphi %s1218_s20, %s23_s20   ;;  %s1174_s19 = sphi %s1216_s19, %s1579_s19   ;;  %s1170_s18 = sphi %s1214_s18, %s1578_s18   ;;  %s1166_s17 = sphi %s1212_s17, %s1574_s17   ;;  %s1162_s16 = sphi %s1210_s16, %s1577_s16   ;;  %s1158_s15 = sphi %s1208_s15, %s1576_s15  }
   0xb   : > { %1558 = sst [smem:[#allocation17_spill]] %s1166_s17  ;;  %s861_s22 = sadd.s32 4294967294, %s1178_s20  }
   0xc   : > { %1559 = sst [smem:[#allocation18_spill]] %s1178_s20  ;;  %s42_s23 = sadd.s32 1, %s1174_s19 }
   0xd   : > { %s53_s24 = sadd.s32 1, %s1166_s17  ;;  %p44_p0 = scmp.ge.s32.totalorder %s42_s23, 2 }
   0xe   : > { %p60_p1 = scmp.ne.s32.totalorder %s1166_s17, %s1162_s16  ;;  %p61_p2 = scmp.eq.s32.totalorder %s1178_s20, 0 }
   0xf   : > { %p66_p3 = scmp.ne.s32.totalorder %s1162_s16, %s1158_s15  ;;  %s1581_s23 = smov (%p44_p0, %s42_s23), 0 }
  0x10   : > { %1560 = sst [smem:[#allocation19_spill]] %s1581_s23  ;;  %p1251_p4 = por %p61_p2, %p60_p1 }
  0x11   : > { %p67_p5 = scmp.eq.s32.totalorder %s1239_s21, 0  ;;  %s48_s26 = ssub.s32 %s1174_s19, %s1581_s23 }
  0x12   : > { %p182_p6 = scmp.eq.s32.totalorder %s1239_s21, 1  ;;  %p51_p7 = scmp.eq.s32.totalorder %s48_s26, 0 }
  0x13   : > { %p1259_p8 = por %p67_p5, %p66_p3  ;;  %p188_p10 = scmp.eq.s32.totalorder %s861_s22, 1 }
  0x14   : > { %p1263_p9 = por %p182_p6, %p60_p1  ;;  %p863_p12 = scmp.ge.s32.totalorder %s1178_s20, 2 }
  0x15   : > { %s1268_s29 = scalar_select %p51_p7, %s1166_s17, %s53_s24  }
  0x16   : > { %p1270_p11 = por %p188_p10, %p66_p3  ;;  %p921_p13 = scmp.lt.s32.totalorder %s1178_s20, 2 }
  0x17   : > { %1564 = sst [smem:[#allocation20_spill]] %s1268_s29  ;;  %s1277_s5 = sand.u32 1, %s1166_s17  }
  0x18   : > { %s1565_s30 = scalar_select %p1270_p11, 1, 0 }
  0x19   : > { %s232_s6 = sand.u32 1, %s1178_s20   ;;  %p1282_p0 = pnand %p921_p13, %p1251_p4 }
  0x1a   : > { %1566 = sst [smem:[#allocation21_spill]] %s1565_s30  ;;  %s235_s11 = scalar_lea.vmem [#allocation9], %s1277_s5 }
  0x1b   : > { %s1568_s1 = sld [smem:[#allocation22_spill]]  ;;  %s244_s12 = sshll.u32 %s235_s11, 4  ;;  %s245_s12 = int_to_ptr.vmem [resolvable:$true] %s244_s12 }
  0x1c   : > { %s1291_s14 = scalar_lea.sflag [#allocation10], %s232_s6  ;;  %s876_s22 = smul.u32 12, %s1277_s5 }
  0x1d   : > { %p868_p1 = scmp.ge.s32.totalorder %s1178_s20, 1  ;;  %p284_p2 = scmp.lt.s32.totalorder %s1178_s20, 3 }
  0x1e   : > { %s864_s25 = sshll.u32 %s1277_s5, 3  ;;  %s875_s26 = sshll.u32 %s1174_s19, 3 }
  0x1f   : > { %p1299_p3 = pnand %p868_p1, %p284_p2  ;;  %s212_s6 = scalar_lea.vmem [#allocation6], %s864_s25 }
  0x20   : > { %s222_s11 = sshll.u32 %s212_s6, 4  ;;  %s1181_s23 = smov 2   ;;  %s223_s11 = int_to_ptr.vmem [resolvable:$true] %s222_s11 }
  0x21   : > { %s240_s10 = scalar_lea.hbm %s1568_s1, %s1174_s19  ;;  %s1180_s1 = smov 32  }
  0x22   : > { %s242_s13 = sshll.u32 %s240_s10, 4  ;;  %s219_s10 = scalar_lea.hbm %s1545_s0, %s875_s26  ;;  %s243_s13 = int_to_ptr.hbm [resolvable:$true] %s242_s13 }
  0x23   : > { %913 = dma.hbm_to_vmem [thread:$0]  (!%p1282_p0), %s243_s13, 16, %s245_s12, %s1291_s14  }
  0x24   : > { %s220_s12 = sshll.u32 %s219_s10, 4  ;;  %s209_s13 = scalar_lea.sflag [#allocation7], %s1277_s5  ;;  %s221_s12 = int_to_ptr.hbm [resolvable:$true] %s220_s12 }
  0x25   : > { %910 = dma.hbm_to_vmem [thread:$0]  (!%p1282_p0), %s221_s12, 128, %s223_s11, %s209_s13, %s1180_s1, %s1180_s1, %s1181_s23  }
  0x26   : > { %s877_s29 = smul.u32 12, %s1174_s19  ;;  %s255_s17 = scalar_lea.vmem [#allocation11], %s876_s22 }
  0x27   : > { %s265_s20 = sshll.u32 %s255_s17, 4  ;;  %288 = sbr.rel (%p1299_p3) target bundleno = 330 (0x14a), region = 36  ;;  %s266_s20 = int_to_ptr.vmem [resolvable:$true] %s265_s20 }
  0x28   : > { %s262_s8 = scalar_lea.hbm %s1547_s2, %s877_s29  ;;  %s1321_s5 = sand.u32 (!%p1299_p3), 1, %s1162_s16  }
  0x29   : > { %s263_s25 = sshll.u32 %s262_s8, 4  ;;  %s869_s17 = sshll.u32 (!%p1299_p3), %s1321_s5, 3  ;;  %s264_s25 = int_to_ptr.hbm [resolvable:$true] %s263_s25 }
  0x2a   : > { %916 = dma.hbm_to_vmem [thread:$0]  (!%p1282_p0), %s264_s25, 192, %s266_s20, %s1291_s14, %s1180_s1, %s1180_s1, %s1181_s23  }
  0x2b   : > { %s291_s22 = scalar_lea.sflag (!%p1299_p3), [#allocation7], %s1321_s5  ;;  %s294_s15 = scalar_lea.vmem (!%p1299_p3), [#allocation6], %s869_s17 }
  0x2c   : > { %1145 = dma.done.wait (%p1259_p8), %s291_s22, 128  }
  0x2d   : > { %1147 = vsyncadd (%p1259_p8), %s291_s22, 4294967168  ;;  %s300_s1 = sand.u32 1, %s1239_s21   ;;  %s303_s23 = scalar_lea.vmem [#allocation9], %s1321_s5 }
  0x2e   : > { %s301_s20 = scalar_lea.sflag [#allocation10], %s300_s1 }
  0x2f   : > { %1149 = dma.done.wait (%p1259_p8), %s301_s20, 208  }
  0x30   : > { %1151 = vsyncadd (%p1259_p8), %s301_s20, 4294967088  ;;  %v1182_v0 = vmov 0.0   ;;  %s878_s29 = smul.u32 12, %s1321_s5  ;;  %vm386_vm0 = vcmask 1041408   ;;  %v1344_v1 = vld [vmem:[%s294_s15] sm:$0x3] }
  0x31   : > { %370 = vst [vmem:[#allocation2] sm:$0x3] %v1182_v0  ;;  %v1346_v2 = vld [vmem:[%s294_s15 + $0x2] sm:$0x3]  ;;  %v1348_v3 = vld [vmem:[%s294_s15 + $0x4] sm:$0x3] }
  0x32   : > { %371 = vst [vmem:[#allocation3] sm:$0x3] %v1182_v0  ;;  %v1350_v4 = vld [vmem:[%s294_s15 + $0x6] sm:$0x3]  ;;  %v387_v5 = vsel %vm386_vm0, %v1344_v1, -inf  ;;  %v388_v6 = vsel %vm386_vm0, %v1346_v2, -inf }
  0x33   : > { %372 = vst [vmem:[#allocation4] sm:$0x3] %v1182_v0  ;;  %v389_v7 = vsel %vm386_vm0, %v1348_v3, -inf  ;;  %v390_v8 = vsel %vm386_vm0, %v1350_v4, -inf  ;;  %v391_v9 = vmax.f32 %v387_v5, %v388_v6  ;;  %s313_s21 = scalar_lea.vmem [#allocation11], %s878_s29  ;;  %p359_p4 = scmp.lt.s32.totalorder %s1170_s18, 1 }
  0x34   : > { %373 = vst [vmem:[#allocation4 + $0x2] sm:$0x3] %v1182_v0  ;;  %v392_v10 = vmax.f32 %v389_v7, %v390_v8  ;;  %v1363_v11 = vld [vmem:[%s313_s21] sm:$0x3]  ;;  %v1368_v13 = vld [vmem:[%s313_s21 + $0x2] sm:$0x3] }
  0x35   : > { %374 = vst [vmem:[#allocation4 + $0x4] sm:$0x3] %v1182_v0  ;;  %v1370_v14 = vld [vmem:[%s313_s21 + $0x4] sm:$0x3]  ;;  %v1380_v19 = vld [vmem:[%s313_s21 + $0x6] sm:$0x3] }
  0x36   : > { %375 = vst [vmem:[#allocation4 + $0x6] sm:$0x3] %v1182_v0  ;;  %v1365_v12 = vmax.f32 %v391_v9, %v392_v10  ;;  %v1382_v20 = vld [vmem:[%s313_s21 + $0x8] sm:$0x3]  ;;  %v1384_v21 = vld [vmem:[%s313_s21 + $0xa] sm:$0x3] }
  0x37   : > { %376 = vst [vmem:[#allocation5] sm:$0x3] %v1182_v0  ;;  %v486_v22 = vsel %vm386_vm0, %v1363_v11, -inf  ;;  %v487_v23 = vsel %vm386_vm0, %v1368_v13, -inf  ;;  %v488_v24 = vsel %vm386_vm0, %v1370_v14, -inf  ;;  %v489_v29 = vsel %vm386_vm0, %v1380_v19, -inf }
  0x38   : > { %377 = vst [vmem:[#allocation5 + $0x2] sm:$0x3] %v1182_v0  ;;  %v394_v15 = vsub.f32 %v1344_v1, %v1365_v12  ;;  %v395_v16 = vsub.f32 %v1346_v2, %v1365_v12  ;;  %v396_v17 = vsub.f32 %v1348_v3, %v1365_v12  ;;  %v397_v18 = vsub.f32 %v1350_v4, %v1365_v12  ;;  %s360_s27 = scalar_select %p359_p4, %s1170_s18, 1  ;;  %v384_v37 = vld [vmem:[%s303_s23] sm:$0x1] }
  0x39   : > { %378 = vst [vmem:[#allocation5 + $0x4] sm:$0x3] %v1182_v0  ;;  %v490_v30 = vsel %vm386_vm0, %v1382_v20, -inf  ;;  %v492_v31 = vsel %vm386_vm0, %v1384_v21, -inf  ;;  %v495_v34 = vmax.f32 %v488_v24, %v489_v29  ;;  %v1427_v47 = vunpack.c.0.s8 %v384_v37  ;;  %s872_s25 = sshll.u32 %s1170_s18, 3  ;;  %s354_s20 = scalar_lea.vmem [#allocation12], %s869_s17 }
  0x3a   : > { %379 = vst [vmem:[#allocation5 + $0x6] sm:$0x3] %v1182_v0  ;;  %v398_v25 = vmul.f32 1.442695, %v394_v15  ;;  %v400_v26 = vmul.f32 1.442695, %v395_v16  ;;  %v491_v32 = vmax.f32 %v486_v22, %v490_v30  ;;  %v493_v33 = vmax.f32 %v487_v23, %v492_v31  ;;  %s364_s14 = scalar_lea.vmem %s1548_s3, %s360_s27  ;;  %s714_s1 = scalar_lea.hbm %s1549_s4, %s872_s25 }
  0x3b   : > { %v402_v27 = vmul.f32 1.442695, %v396_v17  ;;  %v404_v28 = vmul.f32 1.442695, %v397_v18  ;;  %v484_v54 = vld [vmem:[%s364_s14] sm:$0x1] }
  0x3c   : > { %974 = vpow2.f32 %v398_v25  ;;  %v494_v35 = vmax.f32 %v491_v32, %v493_v33  ;;  %vm417_vm1 = vcmp.eq.s32.totalorder %v1427_v47, 0  ;;  %v1440_v62 = vunpack.c.0.s8 %v484_v54  ;;  %v420_v37 = vld [vmem:[#allocation4] sm:$0x3]  ;;  %s716_s23 = sshll.u32 %s354_s20, 4  ;;  %s718_s29 = sshll.u32 %s714_s1, 4  ;;  %s717_s23 = int_to_ptr.vmem [resolvable:$true] %s716_s23  ;;  %s719_s29 = int_to_ptr.hbm [resolvable:$true] %s718_s29 }
  0x3d   : > { %976 = vpow2.f32 %v400_v26  ;;  %v418_v5 = vsel %vm417_vm1, %v1344_v1, 0.0  ;;  %vm429_vm2 = vcmp.eq.s32.totalorder %v1427_v47, 1  ;;  %vm443_vm4 = vcmp.eq.s32.totalorder %v1427_v47, 2  ;;  %s703_s21 = scalar_lea.sflag [#allocation8], %s1321_s5  ;;  %s1106_s27 = sshra.s32 %s719_s29, 4  ;;  %s1107_s27 = int_to_ptr.hbm [resolvable:$true] %s1106_s27 }
  0x3e   : > { %978 = vpow2.f32 %v402_v27  ;;  %v1402_v36 = vmax.f32 %v494_v35, %v495_v34  ;;  %vm501_vm3 = vcmp.eq.s32.totalorder %v1440_v62, 0  ;;  %v430_v9 = vsel %vm429_vm2, %v1346_v2, %v418_v5  ;;  %v447_v5 = vld [vmem:[#allocation4 + $0x4] sm:$0x3]  ;;  %s1108_s30 = scalar_lea.hbm %s1107_s27, 8  ;;  %s1112_s14 = scalar_lea.hbm %s1549_s4, 16 }
  0x3f   : > { %980 = vpow2.f32 %v404_v28  ;;  %v502_v1 = vsel %vm501_vm3, %v1363_v11, 0.0  ;;  %vm507_vm5 = vcmp.eq.s32.totalorder %v1440_v62, 1  ;;  %v444_v22 = vsel %vm443_vm4, %v1348_v3, %v430_v9  ;;  %v471_v3 = vld [vmem:[#allocation2] sm:$0x3]  ;;  %p1109_p5 = scmp.ne.s32.totalorder %s1107_s27, %s1108_s30  ;;  %p1113_p8 = scmp.lt.s32.totalorder %s1107_s27, %s1549_s4 }
  0x40   : > { %v497_v39 = vsub.f32 %v1363_v11, %v1402_v36  ;;  %v503_v40 = vsub.f32 %v1368_v13, %v1402_v36  ;;  %v509_v41 = vsub.f32 %v1370_v14, %v1402_v36  ;;  %v515_v42 = vsub.f32 %v1380_v19, %v1402_v36  ;;  %p1114_p10 = scmp.lt.s32.totalorder %s1112_s14, %s1108_s30 }
  0x41   : > { %v521_v45 = vsub.f32 %v1382_v20, %v1402_v36  ;;  %v527_v56 = vsub.f32 %v1384_v21, %v1402_v36  ;;  %vm457_vm6 = vcmp.eq.s32.totalorder %v1427_v47, 3  ;;  %v508_v27 = vsel %vm507_vm5, %v1368_v13, %v502_v1  ;;  %p1110_p6 = pnand %p1109_p5, %p1263_p9 }
  0x42   : > { %v1406_v38 = vpop.eup %974  ;;  %v498_v49 = vmul.f32 1.442695, %v497_v39  ;;  %v504_v50 = vmul.f32 1.442695, %v503_v40  ;;  %v510_v55 = vmul.f32 1.442695, %v509_v41  ;;  %v458_v11 = vsel %vm457_vm6, %v1350_v4, %v444_v22  ;;  %p1115_p13 = por %p1114_p10, %p1113_p8 }
  0x43   : > { %v1419_v43 = vpop.eup %976  ;;  %v406_v44 = vsel %vm386_vm0, %v1406_v38, 0.0  ;;  %v516_v58 = vmul.f32 1.442695, %v515_v42  ;;  %v522_v59 = vmul.f32 1.442695, %v521_v45  ;;  %vm513_vm7 = vcmp.eq.s32.totalorder %v1440_v62, 2  ;;  %p1111_p7 = pneg %p1110_p6 }
  0x44   : > { %v1425_v46 = vpop.eup %978  ;;  %v407_v48 = vsel %vm386_vm0, %v1419_v43, 0.0  ;;  %982 = vpow2.f32 %v498_v49  ;;  %v528_v63 = vmul.f32 1.442695, %v527_v56  ;;  %v514_v32 = vsel %vm513_vm7, %v1370_v14, %v508_v27  ;;  %v433_v39 = vld [vmem:[#allocation4 + $0x2] sm:$0x3] }
  0x45   : > { %v1431_v51 = vpop.eup %980  ;;  %v408_v52 = vadd.f32 %v407_v48, %v406_v44  ;;  %v409_v53 = vsel %vm386_vm0, %v1425_v46, 0.0  ;;  %984 = vpow2.f32 %v504_v50  ;;  %vm519_vm8 = vcmp.eq.s32.totalorder %v1440_v62, 3  ;;  %v424_v40 = vld [vmem:[#allocation5] sm:$0x3]  ;;  %v438_v41 = vld [vmem:[#allocation5 + $0x2] sm:$0x3]  ;;  %p1116_p0 = pnand %p1115_p13, %p1111_p7 }
  0x46   : > { %v411_v57 = vsel %vm386_vm0, %v1431_v51, 0.0  ;;  %986 = vpow2.f32 %v510_v55  ;;  %v425_v13 = vsel %vm417_vm1, 1.0, %v1182_v0  ;;  %v439_v4 = vsel %vm429_vm2, 1.0, %v1182_v0  ;;  %v452_v55 = vld [vmem:[#allocation5 + $0x4] sm:$0x3] }
  0x47   : > { %v410_v60 = vadd.f32 %v409_v53, %v408_v52  ;;  %988 = vpow2.f32 %v516_v58  ;;  %v520_v42 = vsel %vm519_vm8, %v1380_v19, %v514_v32  ;;  %vm525_vm9 = vcmp.eq.s32.totalorder %v1440_v62, 4 }
  0x48   : > { %990 = vpow2.f32 %v522_v59  ;;  %v453_v52 = vsel %vm443_vm4, 1.0, %v1182_v0  ;;  %v526_v54 = vsel %vm525_vm9, %v1382_v20, %v520_v42  ;;  %vm531_vm10 = vcmp.eq.s32.totalorder %v1440_v62, 5 }
  0x49   : > { %v412_v61 = vadd.f32 %v411_v57, %v410_v60  ;;  %v461_v60 = vld [vmem:[#allocation4 + $0x6] sm:$0x3]  ;;  %v467_v1 = vsel %vm457_vm6, 1.0, %v1182_v0 }
  0x4a   : > { %v983_v6 = vpop.eup %982 }
  0x4b   : > { %992 = vrcp.f32 %v412_v61  ;;  %v985_v7 = vpop.eup %984 }
  0x4c   : > { %994 = vlog2.f32 %v412_v61  ;;  %v987_v8 = vpop.eup %986  ;;  %v506_v10 = vadd.f32 %v985_v7, %v983_v6 }
  0x4d   : > { %996 = vpow2.f32 %v528_v63  ;;  %v989_v15 = vpop.eup %988 }
  0x4e   : > { %v991_v16 = vpop.eup %990  ;;  %v512_v17 = vadd.f32 %v987_v8, %v506_v10 }
  0x50   : > { %v518_v2 = vadd.f32 %v989_v15, %v512_v17 }
  0x51   : > { %v993_v18 = vpop.eup %992 }
  0x52   : > { %v995_v23 = vpop.eup %994  ;;  %v414_v24 = vmul.f32 %v993_v18, %v412_v61  ;;  %v524_v29 = vadd.f32 %v991_v16, %v518_v2  ;;  %v532_v61 = vsel %vm531_vm10, %v1384_v21, %v526_v54 }
  0x53   : > { %v997_v25 = vpop.eup %996  ;;  %v473_v26 = vmul.f32 0.6931472, %v995_v23  ;;  %v466_v23 = vld [vmem:[#allocation5 + $0x6] sm:$0x3] }
  0x54   : > { %v415_v28 = vsub.f32 2.0, %v414_v24  ;;  %v530_v33 = vadd.f32 %v997_v25, %v524_v29 }
  0x55   : > { %v474_v30 = vadd.f32 %v473_v26, %v1365_v12 }
  0x56   : > { %v416_v31 = vmul.f32 %v993_v18, %v415_v28  ;;  %998 = vlog2.f32 %v530_v33 }
  0x57   : > { %v475_v34 = vsub.f32 %v474_v30, %v458_v11 }
  0x58   : > { %v419_v35 = vmul.f32 %v1406_v38, %v416_v31  ;;  %v431_v12 = vmul.f32 %v1419_v43, %v416_v31  ;;  %v445_v50 = vmul.f32 %v1425_v46, %v416_v31  ;;  %v459_v57 = vmul.f32 %v1431_v51, %v416_v31  ;;  %v543_v31 = vld [vmem:[#allocation3] sm:$0x3] }
  0x59   : > { %v476_v14 = vadd.f32 %v475_v34, %v471_v3 }
  0x5a   : > { %v421_v44 = vsel %vm417_vm1, %v419_v35, 0.0  ;;  %v434_v45 = vsel %vm429_vm2, %v431_v12, 0.0  ;;  %v426_v48 = vadd.f32 %v425_v13, %v419_v35  ;;  %v440_v38 = vadd.f32 %v439_v4, %v431_v12 }
  0x5b   : > { %477 = vst [vmem:[#allocation2] sm:$0x3] %v476_v14  ;;  %v422_v49 = vadd.f32 %v421_v44, %v420_v37  ;;  %v435_v43 = vadd.f32 %v434_v45, %v433_v39  ;;  %v454_v56 = vadd.f32 %v453_v52, %v445_v50  ;;  %v462_v63 = vsel %vm457_vm6, %v459_v57, 0.0 }
  0x5c   : > { %v427_v19 = vadd.f32 %v426_v48, %v424_v40  ;;  %v441_v53 = vadd.f32 %v440_v38, %v438_v41  ;;  %v999_v58 = vpop.eup %998  ;;  %v448_v20 = vsel %vm443_vm4, %v445_v50, 0.0  ;;  %v463_v51 = vadd.f32 %v462_v63, %v461_v60 }
  0x5d   : > { %423 = vst [vmem:[#allocation4] sm:$0x3] %v422_v49  ;;  %v534_v59 = vmul.f32 0.6931472, %v999_v58  ;;  %v455_v46 = vadd.f32 %v454_v56, %v452_v55  ;;  %v449_v6 = vadd.f32 %v448_v20, %v447_v5  ;;  %v468_v17 = vadd.f32 %v467_v1, %v459_v57 }
  0x5e   : > { %436 = vst [vmem:[#allocation4 + $0x2] sm:$0x3] %v435_v43 }
  0x5f   : > { %428 = vst [vmem:[#allocation5] sm:$0x3] %v427_v19  ;;  %v535_v62 = vadd.f32 %v534_v59, %v1402_v36  ;;  %v469_v2 = vadd.f32 %v468_v17, %v466_v23 }
  0x60   : > { %442 = vst [vmem:[#allocation5 + $0x2] sm:$0x3] %v441_v53 }
  0x61   : > { %456 = vst [vmem:[#allocation5 + $0x4] sm:$0x3] %v455_v46  ;;  %v536_v9 = vsub.f32 %v535_v62, %v532_v61 }
  0x62   : > { %v553_v7 = vld [vmem:[#allocation2] sm:$0x3]  ;;  %464 = vst [vmem:[#allocation4 + $0x6] sm:$0x3] %v463_v51 }
  0x63   : > { %v554_v8 = vsel %vm386_vm0, %v553_v7, 0.0  ;;  %450 = vst [vmem:[#allocation4 + $0x4] sm:$0x3] %v449_v6  ;;  %v537_v16 = vsub.f32 0.0, %v536_v9 }
  0x64   : > { %555 = vadd.xlane.f32.xlu0 %v554_v8  ;;  %v582_v10 = vld [vmem:[#allocation4] sm:$0x3]  ;;  %470 = vst [vmem:[#allocation5 + $0x6] sm:$0x3] %v469_v2 }
  0x65   : > { %v583_v21 = vsel %vm386_vm0, %v582_v10, 0.0  ;;  %v612_v15 = vld [vmem:[#allocation4 + $0x2] sm:$0x3]  ;;  %v538_v18 = vmul.f32 1.442695, %v537_v16 }
  0x66   : > { %584 = vadd.xlane.f32.xlu1 %v583_v21  ;;  %v613_v36 = vsel %vm386_vm0, %v612_v15, 0.0  ;;  %v597_v22 = vld [vmem:[#allocation5] sm:$0x3] }
  0x67   : > { %614 = vadd.xlane.f32.xlu2 %v613_v36  ;;  %v627_v24 = vld [vmem:[#allocation5 + $0x2] sm:$0x3]  ;;  %1000 = vpow2.f32 %v538_v18  ;;  %v598_v25 = vsel %vm386_vm0, %v597_v22, 0.0 }
  0x68   : > { %v628_v26 = vsel %vm386_vm0, %v627_v24, 0.0  ;;  %v657_v47 = vld [vmem:[#allocation5 + $0x4] sm:$0x3] }
  0x69   : > { %v672_v11 = vld [vmem:[#allocation4 + $0x6] sm:$0x3]  ;;  %v658_v29 = vsel %vm386_vm0, %v657_v47, 0.0 }
  0x6a   : > { %v673_v3 = vsel %vm386_vm0, %v672_v11, 0.0  ;;  %v642_v4 = vld [vmem:[#allocation4 + $0x4] sm:$0x3] }
  0x6b   : > { %v643_v35 = vsel %vm386_vm0, %v642_v4, 0.0  ;;  %v687_v37 = vld [vmem:[#allocation5 + $0x6] sm:$0x3] }
  0x6c   : > { %v688_v12 = vsel %vm386_vm0, %v687_v37, 0.0 }
  0x6d   : > { %v1001_v27 = vpop.eup %1000 }
  0x6e   : > { %599 = vadd.xlane.f32.xlu1 %v598_v25  ;;  %v540_v0 = vsub.f32 1.0, %v1001_v27 }
  0x6f   : > { %629 = vadd.xlane.f32.xlu2 %v628_v26 }
  0x70   : > { %v541_v28 = vmax.f32 %v540_v0, 0.0 }
  0x72   : > { %v542_v30 = vmul.f32 %v541_v28, %v541_v28 }
  0x74   : > { %v544_v32 = vmul.f32 %v542_v30, %v536_v9 }
  0x76   : > { %659 = vadd.xlane.f32.xlu1 %v658_v29  ;;  %v545_v33 = vadd.f32 %v544_v32, %v543_v31 }
  0x77   : > { %674 = vadd.xlane.f32.xlu2 %v673_v3 }
  0x78   : > { %546 = vst [vmem:[#allocation3] sm:$0x3] %v545_v33 }
  0x7f   : > { %v567_v34 = vld [vmem:[#allocation3] sm:$0x3] }
  0x80   : > { %v568_v13 = vsel %vm386_vm0, %v567_v34, 0.0 }
  0x81   : > { %569 = vadd.xlane.f32.xlu0 %v568_v13 }
  0x89   : > { %644 = vadd.xlane.f32.xlu0 %v643_v35 }
  0x91   : > { %689 = vadd.xlane.f32.xlu0 %v688_v12 }
  0xd7   : > { %v556_v39 = vpop.xlane.xlu0 %555 }
  0xd8   : > { %v557_v14 = vrot.slane %v556_v39, 4 }
  0xd9   : > { %v585_v45 = vpop.xlane.xlu1 %584 }
  0xda   : > { %v558_v40 = vadd.f32 %v557_v14, %v556_v39  ;;  %v615_v42 = vpop.xlane.xlu2 %614  ;;  %v586_v50 = vrot.slane %v585_v45, 4 }
  0xdb   : > { %v616_v53 = vrot.slane %v615_v42, 4 }
  0xdc   : > { %v559_v41 = vrot.slane %v558_v40, 2  ;;  %v587_v54 = vadd.f32 %v586_v50, %v585_v45  ;;  %v550_v45 = vlaneseq }
  0xdd   : > { %v617_v59 = vadd.f32 %v616_v53, %v615_v42 }
  0xde   : > { %v560_v44 = vadd.f32 %v559_v41, %v558_v40  ;;  %v588_v60 = vrot.slane %v587_v54, 2 }
  0xdf   : > { %v618_v51 = vrot.slane %v617_v59, 2 }
  0xe0   : > { %v561_v48 = vrot.slane %v560_v44, 1  ;;  %v589_v9 = vadd.f32 %v588_v60, %v587_v54 }
  0xe1   : > { %v600_v43 = vpop.xlane.xlu1 %599  ;;  %v619_v16 = vadd.f32 %v618_v51, %v617_v59 }
  0xe2   : > { %v562_v38 = vadd.f32 %v561_v48, %v560_v44  ;;  %v630_v49 = vpop.xlane.xlu2 %629  ;;  %v601_v52 = vrot.slane %v600_v43, 4  ;;  %v590_v22 = vrot.slane %v589_v9, 1  ;;  %v551_v48 = vand.u32 127, %v550_v45 }
  0xe3   : > { %v631_v19 = vrot.slane %v630_v49, 4  ;;  %v620_v26 = vrot.slane %v619_v16, 1 }
  0xe4   : > { %879 = vpush %v562_v38  ;;  %v602_v56 = vadd.f32 %v601_v52, %v600_v43  ;;  %v591_v28 = vadd.f32 %v590_v22, %v589_v9  ;;  %vm552_vm11 = vcmp.eq.s32.totalorder %v551_v48, 0  ;;  %vm566_vm12 = vcmp.eq.s32.totalorder %v551_v48, 1 }
  0xe5   : > { %v632_v57 = vadd.f32 %v631_v19, %v630_v49  ;;  %v621_v31 = vadd.f32 %v620_v26, %v619_v16  ;;  %vm581_vm13 = vcmp.eq.s32.totalorder %v551_v48, 2  ;;  %vm596_vm14 = vcmp.eq.s32.totalorder %v551_v48, 6 }
  0xe6   : > { %v603_v5 = vrot.slane %v602_v56, 2  ;;  %vm611_vm15 = vcmp.eq.s32.totalorder %v551_v48, 3  ;;  %vm626_vm0 = vcmp.eq.s32.totalorder %v551_v48, 7  ;;  %vm641_vm1 = vcmp.eq.s32.totalorder %v551_v48, 4 }
  0xe7   : > { %v633_v20 = vrot.slane %v632_v57, 2  ;;  %vm656_vm2 = vcmp.eq.s32.totalorder %v551_v48, 8  ;;  %vm671_vm3 = vcmp.eq.s32.totalorder %v551_v48, 5  ;;  %vm686_vm4 = vcmp.eq.s32.totalorder %v551_v48, 9 }
  0xe8   : > { %v604_v21 = vadd.f32 %v603_v5, %v602_v56 }
  0xe9   : > { %v660_v58 = vpop.xlane.xlu1 %659  ;;  %v634_v15 = vadd.f32 %v633_v20, %v632_v57 }
  0xea   : > { %v675_v55 = vpop.xlane.xlu2 %674  ;;  %v661_v63 = vrot.slane %v660_v58, 4  ;;  %v605_v2 = vrot.slane %v604_v21, 1 }
  0xeb   : > { %v676_v46 = vrot.slane %v675_v55, 4  ;;  %v635_v25 = vrot.slane %v634_v15, 1 }
  0xec   : > { %v662_v8 = vadd.f32 %v661_v63, %v660_v58  ;;  %v606_v30 = vadd.f32 %v605_v2, %v604_v21 }
  0xed   : > { %v677_v7 = vadd.f32 %v676_v46, %v675_v55  ;;  %v636_v3 = vadd.f32 %v635_v25, %v634_v15 }
  0xee   : > { %v663_v17 = vrot.slane %v662_v8, 2 }
  0xef   : > { %v678_v1 = vrot.slane %v677_v7, 2 }
  0xf0   : > { %v664_v11 = vadd.f32 %v663_v17, %v662_v8 }
  0xf1   : > { %v679_v27 = vadd.f32 %v678_v1, %v677_v7 }
  0xf2   : > { %v665_v13 = vrot.slane %v664_v11, 1 }
  0xf3   : > { %v680_v33 = vrot.slane %v679_v27, 1 }
  0xf4   : > { %v570_v61 = vpop.xlane.xlu0 %569  ;;  %v666_v14 = vadd.f32 %v665_v13, %v664_v11 }
  0xf5   : > { %v571_v62 = vrot.slane %v570_v61, 4  ;;  %v681_v39 = vadd.f32 %v680_v33, %v679_v27 }
  0xf7   : > { %v572_v6 = vadd.f32 %v571_v62, %v570_v61 }
  0xf9   : > { %v573_v10 = vrot.slane %v572_v6, 2 }
  0xfb   : > { %v574_v36 = vadd.f32 %v573_v10, %v572_v6 }
  0xfc   : > { %v645_v18 = vpop.xlane.xlu0 %644 }
  0xfd   : > { %v646_v23 = vrot.slane %v645_v18, 4  ;;  %v575_v24 = vrot.slane %v574_v36, 1 }
  0xff   : > { %v647_v0 = vadd.f32 %v646_v23, %v645_v18  ;;  %v576_v47 = vadd.f32 %v575_v24, %v574_v36 }
 0x101   : > { %v648_v29 = vrot.slane %v647_v0, 2  ;;  %881 = vpush %v576_v47 }
 0x102   : > { %883 = vpush %v591_v28 }
 0x103   : > { %885 = vpush %v606_v30  ;;  %v649_v32 = vadd.f32 %v648_v29, %v647_v0 }
 0x104   : > { %887 = vpush %v621_v31  ;;  %v690_v34 = vpop.xlane.xlu0 %689 }
 0x105   : > { %889 = vpush %v636_v3  ;;  %v691_v4 = vrot.slane %v690_v34, 4  ;;  %v650_v35 = vrot.slane %v649_v32, 1 }
 0x107   : > { %v692_v37 = vadd.f32 %v691_v4, %v690_v34  ;;  %v651_v12 = vadd.f32 %v650_v35, %v649_v32 }
 0x109   : > { %v693_v40 = vrot.slane %v692_v37, 2  ;;  %891 = vpush %v651_v12 }
 0x10a   : > { %893 = vpush %v666_v14 }
 0x10b   : > { %v694_v41 = vadd.f32 %v693_v40, %v692_v37  ;;  %895 = vpush %v681_v39 }
 0x10d   : > { %v695_v42 = vrot.slane %v694_v41, 1 }
 0x10f   : > { %v696_v44 = vadd.f32 %v695_v42, %v694_v41 }
 0x111   : > { %897 = vpush %v696_v44 }
 0x115   : > { %s880_s24 = spop %879 }
 0x116   : > { %v564_v38 = vstv %s880_s24 }
 0x117   : > { %v565_v43 = vsel %vm552_vm11, %v564_v38, 0.0 }
 0x132   : > { %s882_s26 = spop %881 }
 0x133   : > { %v578_v49 = vstv %s882_s26  ;;  %s884_s9 = spop %883 }
 0x134   : > { %v579_v50 = vsel %vm566_vm12, %v578_v49, 0.0  ;;  %v593_v52 = vstv %s884_s9  ;;  %s886_s10 = spop %885 }
 0x135   : > { %v580_v19 = vadd.f32 %v579_v50, %v565_v43  ;;  %v608_v53 = vstv %s886_s10  ;;  %s888_s6 = spop %887  ;;  %v594_v54 = vsel %vm581_vm13, %v593_v52, 0.0 }
 0x136   : > { %s890_s11 = spop %889  ;;  %v623_v56 = vstv %s888_s6  ;;  %v609_v57 = vsel %vm596_vm14, %v608_v53, 0.0 }
 0x137   : > { %v595_v55 = vadd.f32 %v594_v54, %v580_v19  ;;  %v638_v59 = vstv %s890_s11  ;;  %v624_v46 = vsel %vm611_vm15, %v623_v56, 0.0 }
 0x138   : > { %v639_v63 = vsel %vm626_vm0, %v638_v59, 0.0 }
 0x139   : > { %v610_v58 = vadd.f32 %v609_v57, %v595_v55 }
 0x13a   : > { %s892_s12 = spop %891 }
 0x13b   : > { %v625_v60 = vadd.f32 %v624_v46, %v610_v58  ;;  %v653_v61 = vstv %s892_s12  ;;  %s894_s13 = spop %893 }
 0x13c   : > { %s896_s8 = spop %895  ;;  %v668_v20 = vstv %s894_s13  ;;  %v654_v62 = vsel %vm641_vm1, %v653_v61, 0.0 }
 0x13d   : > { %v640_v5 = vadd.f32 %v639_v63, %v625_v60  ;;  %v683_v6 = vstv %s896_s8  ;;  %v669_v7 = vsel %vm656_vm2, %v668_v20, 0.0 }
 0x13e   : > { %v684_v9 = vsel %vm671_vm3, %v683_v6, 0.0 }
 0x13f   : > { %v655_v51 = vadd.f32 %v654_v62, %v640_v5 }
 0x141   : > { %v670_v8 = vadd.f32 %v669_v7, %v655_v51 }
 0x142   : > { %s898_s18 = spop %897 }
 0x143   : > { %v685_v10 = vadd.f32 %v684_v9, %v670_v8  ;;  %v698_v21 = vstv %s898_s18 }
 0x144   : > { %v699_v15 = vsel %vm686_vm4, %v698_v21, 0.0 }
 0x145   : > { %v700_v16 = vadd.f32 %v699_v15, %v685_v10 }
 0x147   : > { %701 = vst [vmem:[%s354_s20] sm:$0xff] %v700_v16 }
 0x148   : > { %1119 = shalt.err (!%p1116_p0)
}
 0x149   : > { %905 = dma.vmem_to_hbm [thread:$0]  (%p1263_p9), %s717_s23, 128, %s719_s29, %s703_s21  }
 0x14a PF: > { %s1570_s5 = sld [smem:[#allocation16_spill]]  ;;  %p918_p1 = pnand %p863_p12, %p1270_p11 }
 0x14b   : > { %s1572_s10 = sld [smem:[#allocation18_spill]] }
 0x14c   : > { %p919_p2 = pneg %p918_p1 }
 0x150   : > { %s730_s6 = sand.u32 1, %s1570_s5  }
 0x151   : > { %s731_s11 = scalar_lea.sflag [#allocation8], %s730_s6 }
 0x152   : > { %1153 = dma.done.wait (%p919_p2), %s731_s11, 128  }
 0x153   : > { %1155 = vsyncadd (%p919_p2), %s731_s11, 4294967168  ;;  %s23_s20 = sadd.s32 1, %s1572_s10   ;;  %s1573_s12 = sld [smem:[#allocation17_spill]] }
 0x154   : > { %p20_p3 = scmp.ge.s32.totalorder %s23_s20, 4   ;;  %s1574_s17 = sld [smem:[#allocation20_spill]] }
 0x155   : > { %s1575_s28 = sld [smem:[#allocation19_spill]]  ;;  %s1576_s15 = smov %s1162_s16 }
 0x156   : > { %s1578_s18 = smov %s1174_s19 }
 0x157   :  { %22 = sbr.rel (!%p20_p3) target bundleno = 10 (0xa), region = 122 }
 0x159   : > { %s1577_s16 = smov %s1573_s12 }
 0x15b   : > { %s1579_s19 = smov %s1575_s28 }
 0x15c   :  { %737 = vsyncpa [#allocation7], 1 }
 0x15d   :  { %739 = vsyncpa [#allocation7 + $0x1], 1 }
 0x15e   :  { %740 = vsyncpa [#allocation10], 1 }
 0x15f   :  { %742 = vsyncpa [#allocation10 + $0x1], 1 }
 0x160   :  { %743 = vsyncpa [#allocation8], 1 }
 0x161   :  { %745 = vsyncpa [#allocation8 + $0x1], 1 }

</bundles_post_ra>
